<compile_context>
chip_gen: v6e
topology: v6e:2x2x1
jax: 0.10.0
libtpu: 0.0.40
codegen_flags: <defaults>
</compile_context>

<pallas_src>
import functools

import jax
import jax.numpy as jnp
from jax.experimental import pallas as pl
from jax.experimental.pallas import tpu as pltpu


def _round_up(v, m):
    return ((v + m - 1) // m) * m


def _pad2(x, rows, cols):
    r, c = x.shape
    return jnp.pad(x, ((0, rows - r), (0, cols - c)))


# ----------------------------------------------------------------------------
# Fused forward kernel.  grid = (num_layers,); h_ref persists across steps.
# ----------------------------------------------------------------------------
def _fused_gm_kernel(
    # VMEM inputs (constant blocks)
    x_ref, ea_ref, src_oh_ref, dstT_oh_ref, pool_oh_ref, inv_cnt_ref,
    enc_w_ref, enc_b_ref,
    # VMEM inputs (per-layer blocks, indexed by the grid)
    edge_w_ref, edge_b_ref, w1_ref, b1_ref, w2_ref, b2_ref,
    # SMEM input
    eps_ref,
    # output
    out_ref,
    # VMEM scratch (persistent across grid steps)
    h_ref,
    *, num_layers,
):
    f32 = jnp.float32
    bf16 = jnp.bfloat16
    layer = pl.program_id(0)

    # ---- node encoder (first grid step only): h = x @ W_enc + b_enc ----
    @pl.when(layer == 0)
    def _():
        h_ref[...] = (
            jnp.dot(x_ref[...], enc_w_ref[...], preferred_element_type=f32)
            + enc_b_ref[...]
        )

    h = h_ref[...]
    h_b = h.astype(bf16)

    # Edge feature embedding for this layer.
    e = (
        jnp.dot(ea_ref[...], edge_w_ref[...], preferred_element_type=f32)
        + edge_b_ref[...]
    )

    # Gather h[src] via one-hot matmul (MXU), relu message.
    gathered = jnp.dot(src_oh_ref[...], h_b, preferred_element_type=f32)
    msg = jnp.maximum(gathered + e, 0.0)

    # Scatter-add into destinations via one-hot^T matmul; (1+eps)*h self term.
    agg = (1.0 + eps_ref[layer]) * h + jnp.dot(
        dstT_oh_ref[...], msg.astype(bf16), preferred_element_type=f32)

    # GIN MLP update (bf16 MXU operands, f32 accumulate / epilogue).
    # TODO(synk): BatchNorm inside the reference GIN MLP is treated as identity.
    h1 = jnp.maximum(
        jnp.dot(agg.astype(bf16), w1_ref[...], preferred_element_type=f32)
        + b1_ref[...],
        0.0,
    )
    h2 = (
        jnp.dot(h1.astype(bf16), w2_ref[...], preferred_element_type=f32)
        + b2_ref[...]
    )

    not_last = layer < num_layers - 1

    @pl.when(not_last)
    def _():
        h_ref[...] = jnp.maximum(h2, 0.0)

    # ---- global mean pooling (last grid step): one-hot matmul + 1/count ----
    @pl.when(jnp.logical_not(not_last))
    def _():
        pooled = jnp.dot(pool_oh_ref[...], h2.astype(bf16),
                         preferred_element_type=f32)
        out_ref[...] = pooled * inv_cnt_ref[...]


# ----------------------------------------------------------------------------
# Deterministic parameter initialization for the synthetic backbone.
# ----------------------------------------------------------------------------
def init_params(key, in_dim, edge_dim, emb_dim, num_layers):
    def nxt():
        nonlocal key
        key, sub = jax.random.split(key)
        return sub

    params = {
        "node_enc_w": 0.1 * jax.random.normal(nxt(), (in_dim, emb_dim), jnp.float32),
        "node_enc_b": jnp.zeros((emb_dim,), jnp.float32),
        "layers": [],
    }
    for _ in range(num_layers):
        params["layers"].append({
            "edge_w": 0.1 * jax.random.normal(nxt(), (edge_dim, emb_dim), jnp.float32),
            "edge_b": jnp.zeros((emb_dim,), jnp.float32),
            "mlp_w1": 0.1 * jax.random.normal(nxt(), (emb_dim, 2 * emb_dim), jnp.float32),
            "mlp_b1": jnp.zeros((2 * emb_dim,), jnp.float32),
            "mlp_w2": 0.1 * jax.random.normal(nxt(), (2 * emb_dim, emb_dim), jnp.float32),
            "mlp_b2": jnp.zeros((emb_dim,), jnp.float32),
            "eps": jnp.float32(0.0),
        })
    return params


# ----------------------------------------------------------------------------
# One-time parameter preparation (padding / bf16 casting / stacking hoisted
# out of the per-call forward).
# ----------------------------------------------------------------------------
def prepare_params(params):
    in_dim, emb_dim = params["node_enc_w"].shape
    edge_dim = params["layers"][0]["edge_w"].shape[0]
    hid_dim = params["layers"][0]["mlp_w1"].shape[1]
    L = len(params["layers"])

    DIN = _round_up(in_dim, 128)
    DE = _round_up(edge_dim, 128)
    D = _round_up(emb_dim, 128)
    DH = _round_up(hid_dim, 128)

    bf16, f32 = jnp.bfloat16, jnp.float32
    layers = params["layers"]
    return {
        "in_dim": in_dim, "edge_dim": edge_dim, "emb_dim": emb_dim,
        "hid_dim": hid_dim, "num_layers": L,
        "DIN": DIN, "DE": DE, "D": D, "DH": DH,
        "enc_w": _pad2(params["node_enc_w"], DIN, D).astype(bf16),
        "enc_b": _pad2(params["node_enc_b"][None, :], 1, D).astype(f32),
        "edge_w": jnp.stack([_pad2(lp["edge_w"], DE, D) for lp in layers]).astype(bf16),
        "edge_b": jnp.stack([_pad2(lp["edge_b"][None, :], 1, D) for lp in layers]).astype(f32),
        "w1": jnp.stack([_pad2(lp["mlp_w1"], D, DH) for lp in layers]).astype(bf16),
        "b1": jnp.stack([_pad2(lp["mlp_b1"][None, :], 1, DH) for lp in layers]).astype(f32),
        "w2": jnp.stack([_pad2(lp["mlp_w2"], DH, D) for lp in layers]).astype(bf16),
        "b2": jnp.stack([_pad2(lp["mlp_b2"][None, :], 1, D) for lp in layers]).astype(f32),
        "eps": jnp.stack([jnp.asarray(lp["eps"], f32) for lp in layers]),
    }


# ----------------------------------------------------------------------------
# Model_GM.forward(x, edge_index, edge_attr, batch, size) == backbone forward.
# ----------------------------------------------------------------------------
def model_gm_forward(prep, x, edge_index, edge_attr, batch, size):
    N = x.shape[0]
    E = edge_attr.shape[0]
    L = prep["num_layers"]
    DIN, DE, D, DH = prep["DIN"], prep["DE"], prep["D"], prep["DH"]
    emb_dim = prep["emb_dim"]

    bf16, f32 = jnp.bfloat16, jnp.float32

    # Lane-friendly padding: node / edge counts to 128 (they appear as lane
    # dims of the one-hot gather/scatter operands), graph count to 8 sublanes.
    Np = _round_up(N, 128)
    Ep = _round_up(E, 128)
    Gp = _round_up(max(size, 1), 8)

    x_p = _pad2(x.astype(f32), Np, DIN).astype(bf16)
    ea_p = _pad2(edge_attr.astype(f32), Ep, DE).astype(bf16)

    src = edge_index[0].astype(jnp.int32)
    dst = edge_index[1].astype(jnp.int32)
    batch_i = batch.astype(jnp.int32)

    # One-hot gather / scatter / pooling operands (MXU path).  Padded node and
    # edge rows map to all-zero rows/columns, so they never leak.
    src_oh = _pad2(jax.nn.one_hot(src, N, dtype=bf16), Ep, Np)          # (Ep, Np)
    dst_oh_T = _pad2(jax.nn.one_hot(dst, N, dtype=bf16), Ep, Np).T      # (Np, Ep)
    pool_oh = _pad2(jax.nn.one_hot(batch_i, Gp, dtype=bf16).T, Gp, Np)  # (Gp, Np)
    counts = jnp.zeros((Gp,), f32).at[batch_i].add(1.0)
    inv_cnt = (1.0 / jnp.maximum(counts, 1.0)).reshape(Gp, 1)           # (Gp, 1)

    kernel = functools.partial(_fused_gm_kernel, num_layers=L)

    # Advisory cost estimate for XLA scheduling.
    flops = int(
        2 * Np * DIN * D
        + L * (2 * Ep * DE * D + 2 * Ep * Np * D + 2 * Np * Ep * D
               + 2 * Np * D * DH + 2 * Np * DH * D)
        + 2 * Gp * Np * D
    )

    const_inputs = [x_p, ea_p, src_oh, dst_oh_T, pool_oh, inv_cnt,
                    prep["enc_w"], prep["enc_b"]]
    layer_inputs = [prep["edge_w"], prep["edge_b"], prep["w1"], prep["b1"],
                    prep["w2"], prep["b2"]]
    const_bytes = sum(int(a.size) * a.dtype.itemsize for a in const_inputs)
    layer_bytes = sum(int(a.size) * a.dtype.itemsize for a in layer_inputs)
    per_layer_block_bytes = layer_bytes // L
    out_bytes = Gp * D * 4
    scratch_bytes = Np * D * 4
    temp_bytes = (3 * Ep * D + 3 * Np * D + Np * DH) * 4  # e/gather/msg, agg/h2, h1
    needed = (const_bytes + 2 * per_layer_block_bytes + scratch_bytes
              + temp_bytes + 2 * out_bytes)
    vmem_limit = int(min(2 * needed + (8 << 20), 56 << 20))

    bytes_accessed = int(const_bytes + layer_bytes + out_bytes
                         + int(prep["eps"].size) * 4)

    grid_spec = pltpu.PrefetchScalarGridSpec(
        num_scalar_prefetch=0,
        grid=(L,),
        in_specs=[
            pl.BlockSpec((Np, DIN), lambda l: (0, 0)),           # x
            pl.BlockSpec((Ep, DE), lambda l: (0, 0)),            # edge_attr
            pl.BlockSpec((Ep, Np), lambda l: (0, 0)),            # src one-hot
            pl.BlockSpec((Np, Ep), lambda l: (0, 0)),            # dst one-hot^T
            pl.BlockSpec((Gp, Np), lambda l: (0, 0)),            # pool one-hot
            pl.BlockSpec((Gp, 1), lambda l: (0, 0)),             # 1 / count
            pl.BlockSpec((DIN, D), lambda l: (0, 0)),            # enc_w
            pl.BlockSpec((1, D), lambda l: (0, 0)),              # enc_b
            pl.BlockSpec((None, DE, D), lambda l: (l, 0, 0)),    # edge_w[l]
            pl.BlockSpec((None, 1, D), lambda l: (l, 0, 0)),     # edge_b[l]
            pl.BlockSpec((None, D, DH), lambda l: (l, 0, 0)),    # w1[l]
            pl.BlockSpec((None, 1, DH), lambda l: (l, 0, 0)),    # b1[l]
            pl.BlockSpec((None, DH, D), lambda l: (l, 0, 0)),    # w2[l]
            pl.BlockSpec((None, 1, D), lambda l: (l, 0, 0)),     # b2[l]
            pl.BlockSpec(memory_space=pltpu.MemorySpace.SMEM),   # eps (L,) f32
        ],
        out_specs=pl.BlockSpec((Gp, D), lambda l: (0, 0)),
        scratch_shapes=[pltpu.VMEM((Np, D), f32)],               # h (persistent)
    )

    out = pl.pallas_call(
        kernel,
        out_shape=jax.ShapeDtypeStruct((Gp, D), f32),
        grid_spec=grid_spec,
        compiler_params=pltpu.CompilerParams(
            dimension_semantics=("arbitrary",),
            vmem_limit_bytes=vmem_limit),
        cost_estimate=pl.CostEstimate(
            flops=flops, transcendentals=0, bytes_accessed=bytes_accessed),
    )(x_p, ea_p, src_oh, dst_oh_T, pool_oh, inv_cnt,
      prep["enc_w"], prep["enc_b"],
      prep["edge_w"], prep["edge_b"], prep["w1"], prep["b1"],
      prep["w2"], prep["b2"], prep["eps"])

    return out[:size, :emb_dim]


# ----------------------------------------------------------------------------
# Plain-JAX reference (same math) for a correctness cross-check.
# ----------------------------------------------------------------------------
def model_gm_forward_reference(params, x, edge_index, edge_attr, batch, size):
    src, dst = edge_index[0], edge_index[1]
    h = x @ params["node_enc_w"] + params["node_enc_b"]
    L = len(params["layers"])
    for li, lp in enumerate(params["layers"]):
        e = edge_attr @ lp["edge_w"] + lp["edge_b"]
        msg = jnp.maximum(h[src] + e, 0.0)
        agg = (1.0 + lp["eps"]) * h + jnp.zeros_like(h).at[dst].add(msg)
        h1 = jnp.maximum(agg @ lp["mlp_w1"] + lp["mlp_b1"], 0.0)
        h = h1 @ lp["mlp_w2"] + lp["mlp_b2"]
        if li < L - 1:
            h = jnp.maximum(h, 0.0)
    pooled = jnp.zeros((size, h.shape[1]), h.dtype).at[batch].add(h)
    counts = jnp.maximum(jnp.zeros((size,), h.dtype).at[batch].add(1.0), 1.0)
    return pooled / counts[:, None]


if __name__ == "__main__":
    # Small, deterministic synthetic graph batch.
    IN_DIM, EDGE_DIM, EMB_DIM, NUM_LAYERS = 16, 4, 32, 2
    N_NODES, N_EDGES, N_GRAPHS = 10, 20, 2

    key = jax.random.PRNGKey(0)
    k_x, k_e, k_src, k_dst, k_par = jax.random.split(key, 5)

    x = jax.random.normal(k_x, (N_NODES, IN_DIM), jnp.float32)
    edge_attr = jax.random.normal(k_e, (N_EDGES, EDGE_DIM), jnp.float32)
    edge_index = jnp.stack([
        jax.random.randint(k_src, (N_EDGES,), 0, N_NODES),
        jax.random.randint(k_dst, (N_EDGES,), 0, N_NODES),
    ]).astype(jnp.int32)
    batch = jnp.concatenate([
        jnp.zeros((N_NODES // 2,), jnp.int32),
        jnp.ones((N_NODES - N_NODES // 2,), jnp.int32),
    ])
    size = N_GRAPHS

    params = init_params(k_par, IN_DIM, EDGE_DIM, EMB_DIM, NUM_LAYERS)
    prep = prepare_params(params)   # one-time padding / casting / stacking

    out = model_gm_forward(prep, x, edge_index, edge_attr, batch, size)
    out = jax.block_until_ready(out)

    ref = model_gm_forward_reference(params, x, edge_index, edge_attr, batch, size)

    assert out.shape == (N_GRAPHS, EMB_DIM), out.shape
    assert jnp.all(jnp.isfinite(out))
    max_err = float(jnp.max(jnp.abs(out - ref)))
    assert jnp.allclose(out, ref, rtol=5e-2, atol=5e-2), max_err
    print("KERNEL_OK")
</pallas_src>

<mosaic_0001>
module attributes {stable_mosaic.version = 11 : i64} {
  func.func @_fused_gm_kernel(%arg0: i32, %arg1: memref<128x128xbf16, #tpu.memory_space<vmem>>, %arg2: memref<128x128xbf16, #tpu.memory_space<vmem>>, %arg3: memref<128x128xbf16, #tpu.memory_space<vmem>>, %arg4: memref<128x128xbf16, #tpu.memory_space<vmem>>, %arg5: memref<8x128xbf16, #tpu.memory_space<vmem>>, %arg6: memref<8x1xf32, #tpu.memory_space<vmem>>, %arg7: memref<128x128xbf16, #tpu.memory_space<vmem>>, %arg8: memref<1x128xf32, #tpu.memory_space<vmem>>, %arg9: memref<1x128x128xbf16, #tpu.memory_space<vmem>>, %arg10: memref<1x1x128xf32, #tpu.memory_space<vmem>>, %arg11: memref<1x128x128xbf16, #tpu.memory_space<vmem>>, %arg12: memref<1x1x128xf32, #tpu.memory_space<vmem>>, %arg13: memref<1x128x128xbf16, #tpu.memory_space<vmem>>, %arg14: memref<1x1x128xf32, #tpu.memory_space<vmem>>, %arg15: memref<2xf32, #tpu.memory_space<smem>>, %arg16: memref<8x128xf32, #tpu.memory_space<vmem>>, %arg17: memref<128x128xf32, #tpu.memory_space<vmem>>) attributes {dimension_semantics = [#tpu.dimension_semantics<arbitrary>], iteration_bounds = array<i64: 2>, scalar_prefetch = 0 : i64, scratch_operands = 1 : i64, tpu.core_type = #tpu.core_type<tc>, window_params = [{pipeline_mode = #tpu.pipeline_mode<synchronous>, transform_indices = @transform_0, window_bounds = array<i64: 128, 128>}, {pipeline_mode = #tpu.pipeline_mode<synchronous>, transform_indices = @transform_1, window_bounds = array<i64: 128, 128>}, {pipeline_mode = #tpu.pipeline_mode<synchronous>, transform_indices = @transform_2, window_bounds = array<i64: 128, 128>}, {pipeline_mode = #tpu.pipeline_mode<synchronous>, transform_indices = @transform_3, window_bounds = array<i64: 128, 128>}, {pipeline_mode = #tpu.pipeline_mode<synchronous>, transform_indices = @transform_4, window_bounds = array<i64: 8, 128>}, {pipeline_mode = #tpu.pipeline_mode<synchronous>, transform_indices = @transform_5, window_bounds = array<i64: 8, 1>}, {pipeline_mode = #tpu.pipeline_mode<synchronous>, transform_indices = @transform_6, window_bounds = array<i64: 128, 128>}, {pipeline_mode = #tpu.pipeline_mode<synchronous>, transform_indices = @transform_7, window_bounds = array<i64: 1, 128>}, {transform_indices = @transform_8, window_bounds = array<i64: 1, 128, 128>}, {transform_indices = @transform_9, window_bounds = array<i64: 1, 1, 128>}, {transform_indices = @transform_10, window_bounds = array<i64: 1, 128, 128>}, {transform_indices = @transform_11, window_bounds = array<i64: 1, 1, 128>}, {transform_indices = @transform_12, window_bounds = array<i64: 1, 128, 128>}, {transform_indices = @transform_13, window_bounds = array<i64: 1, 1, 128>}, {transform_indices = @transform_14, window_bounds = array<i64: 2>}, {pipeline_mode = #tpu.pipeline_mode<synchronous>, transform_indices = @transform_15, window_bounds = array<i64: 8, 128>}]} {
    %c0_i32 = arith.constant 0 : i32
    %0 = arith.cmpi eq, %arg0, %c0_i32 : i32
    %1 = arith.extui %0 : i1 to i32
    %c0_i32_0 = arith.constant 0 : i32
    %2 = arith.cmpi ne, %1, %c0_i32_0 : i32
    scf.if %2 {
      %c0_35 = arith.constant 0 : index
      %c0_36 = arith.constant 0 : index
      %51 = vector.load %arg1[%c0_35, %c0_36] : memref<128x128xbf16, #tpu.memory_space<vmem>>, vector<128x128xbf16>
      %c0_37 = arith.constant 0 : index
      %c0_38 = arith.constant 0 : index
      %52 = vector.load %arg7[%c0_37, %c0_38] : memref<128x128xbf16, #tpu.memory_space<vmem>>, vector<128x128xbf16>
      %cst_39 = arith.constant dense<0.000000e+00> : vector<128x128xf32>
      %53 = tpu.matmul %51, %52, %cst_39 {dimension_numbers = #tpu.dot_dimension_numbers<[1], [0], [0], [1], [0, 0, 1, 1], [], []>} : vector<128x128xbf16>, vector<128x128xbf16>, vector<128x128xf32> -> vector<128x128xf32>
      %c0_40 = arith.constant 0 : index
      %c0_41 = arith.constant 0 : index
      %54 = vector.load %arg8[%c0_40, %c0_41] : memref<1x128xf32, #tpu.memory_space<vmem>>, vector<1x128xf32>
      %55 = vector.broadcast %54 : vector<1x128xf32> to vector<128x128xf32>
      %56 = arith.addf %53, %55 : vector<128x128xf32>
      %c0_42 = arith.constant 0 : index
      %c0_43 = arith.constant 0 : index
      %57 = vector.load %arg17[%c0_42, %c0_43] : memref<128x128xf32, #tpu.memory_space<vmem>>, vector<128x128xf32>
      tpu.vector_store %arg17[%c0_42, %c0_43], %56 {strides = array<i32>} : memref<128x128xf32, #tpu.memory_space<vmem>>, vector<128x128xf32>,
    } else {
    }
    %c0 = arith.constant 0 : index
    %c0_1 = arith.constant 0 : index
    %3 = vector.load %arg17[%c0, %c0_1] : memref<128x128xf32, #tpu.memory_space<vmem>>, vector<128x128xf32>
    %4 = arith.truncf %3 : vector<128x128xf32> to vector<128x128xbf16>
    %c0_2 = arith.constant 0 : index
    %c0_3 = arith.constant 0 : index
    %5 = vector.load %arg2[%c0_2, %c0_3] : memref<128x128xbf16, #tpu.memory_space<vmem>>, vector<128x128xbf16>
    %c0_4 = arith.constant 0 : index
    %c0_5 = arith.constant 0 : index
    %c0_6 = arith.constant 0 : index
    %6 = vector.load %arg9[%c0_4, %c0_5, %c0_6] : memref<1x128x128xbf16, #tpu.memory_space<vmem>>, vector<1x128x128xbf16>
    %7 = vector.shape_cast %6 : vector<1x128x128xbf16> to vector<128x128xbf16>
    %cst = arith.constant dense<0.000000e+00> : vector<128x128xf32>
    %8 = tpu.matmul %5, %7, %cst {dimension_numbers = #tpu.dot_dimension_numbers<[1], [0], [0], [1], [0, 0, 1, 1], [], []>} : vector<128x128xbf16>, vector<128x128xbf16>, vector<128x128xf32> -> vector<128x128xf32>
    %c0_7 = arith.constant 0 : index
    %c0_8 = arith.constant 0 : index
    %c0_9 = arith.constant 0 : index
    %9 = vector.load %arg10[%c0_7, %c0_8, %c0_9] : memref<1x1x128xf32, #tpu.memory_space<vmem>>, vector<1x1x128xf32>
    %10 = vector.shape_cast %9 : vector<1x1x128xf32> to vector<1x128xf32>
    %11 = vector.broadcast %10 : vector<1x128xf32> to vector<128x128xf32>
    %12 = arith.addf %8, %11 : vector<128x128xf32>
    %c0_10 = arith.constant 0 : index
    %c0_11 = arith.constant 0 : index
    %13 = vector.load %arg3[%c0_10, %c0_11] : memref<128x128xbf16, #tpu.memory_space<vmem>>, vector<128x128xbf16>
    %cst_12 = arith.constant dense<0.000000e+00> : vector<128x128xf32>
    %14 = tpu.matmul %13, %4, %cst_12 {dimension_numbers = #tpu.dot_dimension_numbers<[1], [0], [0], [1], [0, 0, 1, 1], [], []>} : vector<128x128xbf16>, vector<128x128xbf16>, vector<128x128xf32> -> vector<128x128xf32>
    %15 = arith.addf %14, %12 : vector<128x128xf32>
    %cst_13 = arith.constant 0.000000e+00 : f32
    %16 = vector.broadcast %cst_13 : f32 to vector<128x128xf32>
    %17 = arith.maximumf %15, %16 : vector<128x128xf32>
    %18 = arith.index_cast %arg0 : i32 to index
    %19 = memref.load %arg15[%18] : memref<2xf32, #tpu.memory_space<smem>>
    %cst_14 = arith.constant 1.000000e+00 : f32
    %20 = arith.addf %cst_14, %19 : f32
    %21 = vector.broadcast %20 : f32 to vector<128x128xf32>
    %22 = arith.mulf %21, %3 : vector<128x128xf32>
    %c0_15 = arith.constant 0 : index
    %c0_16 = arith.constant 0 : index
    %23 = vector.load %arg4[%c0_15, %c0_16] : memref<128x128xbf16, #tpu.memory_space<vmem>>, vector<128x128xbf16>
    %24 = arith.truncf %17 : vector<128x128xf32> to vector<128x128xbf16>
    %cst_17 = arith.constant dense<0.000000e+00> : vector<128x128xf32>
    %25 = tpu.matmul %23, %24, %cst_17 {dimension_numbers = #tpu.dot_dimension_numbers<[1], [0], [0], [1], [0, 0, 1, 1], [], []>} : vector<128x128xbf16>, vector<128x128xbf16>, vector<128x128xf32> -> vector<128x128xf32>
    %26 = arith.addf %22, %25 : vector<128x128xf32>
    %27 = arith.truncf %26 : vector<128x128xf32> to vector<128x128xbf16>
    %c0_18 = arith.constant 0 : index
    %c0_19 = arith.constant 0 : index
    %c0_20 = arith.constant 0 : index
    %28 = vector.load %arg11[%c0_18, %c0_19, %c0_20] : memref<1x128x128xbf16, #tpu.memory_space<vmem>>, vector<1x128x128xbf16>
    %29 = vector.shape_cast %28 : vector<1x128x128xbf16> to vector<128x128xbf16>
    %cst_21 = arith.constant dense<0.000000e+00> : vector<128x128xf32>
    %30 = tpu.matmul %27, %29, %cst_21 {dimension_numbers = #tpu.dot_dimension_numbers<[1], [0], [0], [1], [0, 0, 1, 1], [], []>} : vector<128x128xbf16>, vector<128x128xbf16>, vector<128x128xf32> -> vector<128x128xf32>
    %c0_22 = arith.constant 0 : index
    %c0_23 = arith.constant 0 : index
    %c0_24 = arith.constant 0 : index
    %31 = vector.load %arg12[%c0_22, %c0_23, %c0_24] : memref<1x1x128xf32, #tpu.memory_space<vmem>>, vector<1x1x128xf32>
    %32 = vector.shape_cast %31 : vector<1x1x128xf32> to vector<1x128xf32>
    %33 = vector.broadcast %32 : vector<1x128xf32> to vector<128x128xf32>
    %34 = arith.addf %30, %33 : vector<128x128xf32>
    %cst_25 = arith.constant 0.000000e+00 : f32
    %35 = vector.broadcast %cst_25 : f32 to vector<128x128xf32>
    %36 = arith.maximumf %34, %35 : vector<128x128xf32>
    %37 = arith.truncf %36 : vector<128x128xf32> to vector<128x128xbf16>
    %c0_26 = arith.constant 0 : index
    %c0_27 = arith.constant 0 : index
    %c0_28 = arith.constant 0 : index
    %38 = vector.load %arg13[%c0_26, %c0_27, %c0_28] : memref<1x128x128xbf16, #tpu.memory_space<vmem>>, vector<1x128x128xbf16>
    %39 = vector.shape_cast %38 : vector<1x128x128xbf16> to vector<128x128xbf16>
    %cst_29 = arith.constant dense<0.000000e+00> : vector<128x128xf32>
    %40 = tpu.matmul %37, %39, %cst_29 {dimension_numbers = #tpu.dot_dimension_numbers<[1], [0], [0], [1], [0, 0, 1, 1], [], []>} : vector<128x128xbf16>, vector<128x128xbf16>, vector<128x128xf32> -> vector<128x128xf32>
    %c0_30 = arith.constant 0 : index
    %c0_31 = arith.constant 0 : index
    %c0_32 = arith.constant 0 : index
    %41 = vector.load %arg14[%c0_30, %c0_31, %c0_32] : memref<1x1x128xf32, #tpu.memory_space<vmem>>, vector<1x1x128xf32>
    %42 = vector.shape_cast %41 : vector<1x1x128xf32> to vector<1x128xf32>
    %43 = vector.broadcast %42 : vector<1x128xf32> to vector<128x128xf32>
    %44 = arith.addf %40, %43 : vector<128x128xf32>
    %c1_i32 = arith.constant 1 : i32
    %45 = arith.cmpi slt, %arg0, %c1_i32 : i32
    %46 = arith.extui %45 : i1 to i32
    %c0_i32_33 = arith.constant 0 : i32
    %47 = arith.cmpi ne, %46, %c0_i32_33 : i32
    scf.if %47 {
      %cst_35 = arith.constant 0.000000e+00 : f32
      %51 = vector.broadcast %cst_35 : f32 to vector<128x128xf32>
      %52 = arith.maximumf %44, %51 : vector<128x128xf32>
      %c0_36 = arith.constant 0 : index
      %c0_37 = arith.constant 0 : index
      %53 = vector.load %arg17[%c0_36, %c0_37] : memref<128x128xf32, #tpu.memory_space<vmem>>, vector<128x128xf32>
      tpu.vector_store %arg17[%c0_36, %c0_37], %52 {strides = array<i32>} : memref<128x128xf32, #tpu.memory_space<vmem>>, vector<128x128xf32>,
    } else {
    }
    %true = arith.constant true
    %48 = arith.xori %45, %true : i1
    %49 = arith.extui %48 : i1 to i32
    %c0_i32_34 = arith.constant 0 : i32
    %50 = arith.cmpi ne, %49, %c0_i32_34 : i32
    scf.if %50 {
      %c0_35 = arith.constant 0 : index
      %c0_36 = arith.constant 0 : index
      %51 = vector.load %arg5[%c0_35, %c0_36] : memref<8x128xbf16, #tpu.memory_space<vmem>>, vector<8x128xbf16>
      %52 = arith.truncf %44 : vector<128x128xf32> to vector<128x128xbf16>
      %cst_37 = arith.constant dense<0.000000e+00> : vector<8x128xf32>
      %53 = tpu.matmul %51, %52, %cst_37 {dimension_numbers = #tpu.dot_dimension_numbers<[1], [0], [0], [1], [0, 0, 1, 1], [], []>} : vector<8x128xbf16>, vector<128x128xbf16>, vector<8x128xf32> -> vector<8x128xf32>
      %c0_38 = arith.constant 0 : index
      %c0_39 = arith.constant 0 : index
      %54 = vector.load %arg6[%c0_38, %c0_39] : memref<8x1xf32, #tpu.memory_space<vmem>>, vector<8x1xf32>
      %55 = vector.broadcast %54 : vector<8x1xf32> to vector<8x128xf32>
      %56 = arith.mulf %53, %55 : vector<8x128xf32>
      %c0_40 = arith.constant 0 : index
      %c0_41 = arith.constant 0 : index
      %57 = vector.load %arg16[%c0_40, %c0_41] : memref<8x128xf32, #tpu.memory_space<vmem>>, vector<8x128xf32>
      tpu.vector_store %arg16[%c0_40, %c0_41], %56 {strides = array<i32>} : memref<8x128xf32, #tpu.memory_space<vmem>>, vector<8x128xf32>,
    } else {
    }
    return
  }
  func.func @transform_0(%arg0: i32) -> (i32, i32) {
    %c0_i32 = arith.constant 0 : i32
    %c0_i32_0 = arith.constant 0 : i32
    %c0_i32_1 = arith.constant 0 : i32
    return %c0_i32, %c0_i32_0 : i32, i32
  }
  func.func @transform_1(%arg0: i32) -> (i32, i32) {
    %c0_i32 = arith.constant 0 : i32
    %c0_i32_0 = arith.constant 0 : i32
    %c0_i32_1 = arith.constant 0 : i32
    return %c0_i32, %c0_i32_0 : i32, i32
  }
  func.func @transform_2(%arg0: i32) -> (i32, i32) {
    %c0_i32 = arith.constant 0 : i32
    %c0_i32_0 = arith.constant 0 : i32
    %c0_i32_1 = arith.constant 0 : i32
    return %c0_i32, %c0_i32_0 : i32, i32
  }
  func.func @transform_3(%arg0: i32) -> (i32, i32) {
    %c0_i32 = arith.constant 0 : i32
    %c0_i32_0 = arith.constant 0 : i32
    %c0_i32_1 = arith.constant 0 : i32
    return %c0_i32, %c0_i32_0 : i32, i32
  }
  func.func @transform_4(%arg0: i32) -> (i32, i32) {
    %c0_i32 = arith.constant 0 : i32
    %c0_i32_0 = arith.constant 0 : i32
    %c0_i32_1 = arith.constant 0 : i32
    return %c0_i32, %c0_i32_0 : i32, i32
  }
  func.func @transform_5(%arg0: i32) -> (i32, i32) {
    %c0_i32 = arith.constant 0 : i32
    %c0_i32_0 = arith.constant 0 : i32
    %c0_i32_1 = arith.constant 0 : i32
    return %c0_i32, %c0_i32_0 : i32, i32
  }
  func.func @transform_6(%arg0: i32) -> (i32, i32) {
    %c0_i32 = arith.constant 0 : i32
    %c0_i32_0 = arith.constant 0 : i32
    %c0_i32_1 = arith.constant 0 : i32
    return %c0_i32, %c0_i32_0 : i32, i32
  }
  func.func @transform_7(%arg0: i32) -> (i32, i32) {
    %c0_i32 = arith.constant 0 : i32
    %c0_i32_0 = arith.constant 0 : i32
    %c0_i32_1 = arith.constant 0 : i32
    return %c0_i32, %c0_i32_0 : i32, i32
  }
  func.func @transform_8(%arg0: i32) -> (i32, i32, i32) {
    %c0_i32 = arith.constant 0 : i32
    %c0_i32_0 = arith.constant 0 : i32
    %c0_i32_1 = arith.constant 0 : i32
    return %arg0, %c0_i32, %c0_i32_0 : i32, i32, i32
  }
  func.func @transform_9(%arg0: i32) -> (i32, i32, i32) {
    %c0_i32 = arith.constant 0 : i32
    %c0_i32_0 = arith.constant 0 : i32
    %c0_i32_1 = arith.constant 0 : i32
    return %arg0, %c0_i32, %c0_i32_0 : i32, i32, i32
  }
  func.func @transform_10(%arg0: i32) -> (i32, i32, i32) {
    %c0_i32 = arith.constant 0 : i32
    %c0_i32_0 = arith.constant 0 : i32
    %c0_i32_1 = arith.constant 0 : i32
    return %arg0, %c0_i32, %c0_i32_0 : i32, i32, i32
  }
  func.func @transform_11(%arg0: i32) -> (i32, i32, i32) {
    %c0_i32 = arith.constant 0 : i32
    %c0_i32_0 = arith.constant 0 : i32
    %c0_i32_1 = arith.constant 0 : i32
    return %arg0, %c0_i32, %c0_i32_0 : i32, i32, i32
  }
  func.func @transform_12(%arg0: i32) -> (i32, i32, i32) {
    %c0_i32 = arith.constant 0 : i32
    %c0_i32_0 = arith.constant 0 : i32
    %c0_i32_1 = arith.constant 0 : i32
    return %arg0, %c0_i32, %c0_i32_0 : i32, i32, i32
  }
  func.func @transform_13(%arg0: i32) -> (i32, i32, i32) {
    %c0_i32 = arith.constant 0 : i32
    %c0_i32_0 = arith.constant 0 : i32
    %c0_i32_1 = arith.constant 0 : i32
    return %arg0, %c0_i32, %c0_i32_0 : i32, i32, i32
  }
  func.func @transform_14(%arg0: i32) -> i32 {
    %c0_i32 = arith.constant 0 : i32
    %c0_i32_0 = arith.constant 0 : i32
    return %c0_i32 : i32
  }
  func.func @transform_15(%arg0: i32) -> (i32, i32) {
    %c0_i32 = arith.constant 0 : i32
    %c0_i32_0 = arith.constant 0 : i32
    %c0_i32_1 = arith.constant 0 : i32
    return %c0_i32, %c0_i32_0 : i32, i32
  }
}

</mosaic_0001>

<bundles_post_ra>
// kernel: tpu_custom_call.1
= control target key start
LH: loop header
LB: loop body
LE: loop exit
PB: predicated region body
PF: predicated region fallthrough
CT: control target
= control target key end

     0   :  { %s3832_s0 = inlined_call_operand.hbm [shape: bf16[128,128], index: 0, kind: input, shape index: {}]   ;;  %s3833_s1 = inlined_call_operand.hbm [shape: bf16[128,128], index: 1, kind: input, shape index: {}]   ;;  %s3834_s2 = inlined_call_operand.hbm [shape: bf16[128,128], index: 2, kind: input, shape index: {}]   ;;  %s3835_s3 = inlined_call_operand.hbm [shape: bf16[128,128], index: 3, kind: input, shape index: {}]   ;;  %s3836_s4 = inlined_call_operand.vmem [shape: bf16[8,128], index: 4, kind: input, shape index: {}]   ;;  %s3837_s5 = inlined_call_operand.vmem [shape: f32[8,1], index: 5, kind: input, shape index: {}]   ;;  %s3838_s6 = inlined_call_operand.hbm [shape: bf16[128,128], index: 6, kind: input, shape index: {}]   ;;  %s3839_s7 = inlined_call_operand.vmem [shape: f32[1,128], index: 7, kind: input, shape index: {}]   ;;  %s3840_s8 = inlined_call_operand.hbm [shape: bf16[2,128,128], index: 8, kind: input, shape index: {}]   ;;  %s3841_s9 = inlined_call_operand.vmem [shape: f32[2,1,128], index: 9, kind: input, shape index: {}]   ;;  %s3842_s10 = inlined_call_operand.hbm [shape: bf16[2,128,128], index: 10, kind: input, shape index: {}]   ;;  %s3843_s11 = inlined_call_operand.vmem [shape: f32[2,1,128], index: 11, kind: input, shape index: {}]   ;;  %s3844_s12 = inlined_call_operand.hbm [shape: bf16[2,128,128], index: 12, kind: input, shape index: {}]   ;;  %s3845_s13 = inlined_call_operand.vmem [shape: f32[2,1,128], index: 13, kind: input, shape index: {}]   ;;  %s3846_s14 = inlined_call_operand.vmem [shape: f32[2], index: 14, kind: input, shape index: {}]   ;;  %s3847_s15 = inlined_call_operand.hbm [shape: f32[8,128], index: 15, kind: output, shape index: {}]  }
   0x1   :  { %3862 = sst [smem:[#allocation29_spill]] %s3832_s0 }
   0x2   :  { %3863 = sst [smem:[#allocation30_spill]] %s3833_s1 }
   0x3   :  { %3864 = sst [smem:[#allocation31_spill]] %s3835_s3 }
   0x4   :  { %3865 = sst [smem:[#allocation32_spill]] %s3836_s4 }
   0x5   :  { %3866 = sst [smem:[#allocation33_spill]] %s3837_s5 }
   0x6   :  { %3867 = sst [smem:[#allocation34_spill]] %s3839_s7 }
   0x7   :  { %3868 = sst [smem:[#allocation35_spill]] %s3843_s11 }
   0x8   :  { %3869 = sst [smem:[#allocation36_spill]] %s3845_s13 }
   0x9   :  { %3870 = sst [smem:[#allocation37_spill]] %s3847_s15 }
   0xa   :  { %20 = vsyncpa [#allocation4], 0 }
   0xb   :  { %21 = vsyncpa [#allocation8], 0 }
   0xc   :  { %22 = vsyncpa [#allocation11], 0 }
   0xd   :  { %23 = vsyncpa [#allocation14], 0 }
   0xe   :  { %25 = vsyncpa [#allocation14 + $0x1], 0 }
   0xf   :  { %26 = vsyncpa [#allocation17], 0 }
  0x10   :  { %28 = vsyncpa [#allocation17 + $0x1], 0 }
  0x11   :  { %29 = vsyncpa [#allocation6], 0 }
  0x12   :  { %30 = vsyncpa [#allocation5], 0  ;;  %s3301_s18 = smov 0   ;;  %s3303_s19 = smov 0  }
  0x13   :  { %s3305_s20 = smov 0   ;;  %s3307_s21 = smov 0  }
  0x14 LB: > { %s3322_s22 = sadd.s32 4294967295, %s3204_s21   ;;  %p2252_p0 = scmp.ge.s32.totalorder %s3204_s21, 1  ;;  %s3204_s21 = sphi %s3307_s21, %s3906_s21   ;;  %s3200_s20 = sphi %s3305_s20, %s3910_s20   ;;  %s3196_s19 = sphi %s3303_s19, %s3909_s19   ;;  %s3192_s18 = sphi %s3301_s18, %s3908_s18  }
  0x15   : > { %p3855_p1 = scmp.eq.s32.totalorder %s3322_s22, 0  ;;  %p407_p2 = scmp.lt.s32.totalorder %s3204_s21, 3 }
  0x16   : > { %s3206_s24 = smov [#allocation7]   ;;  %s3207_s26 = smov [#allocation10]  }
  0x17   : > { %p3328_p4 = pnand %p2252_p0, %p407_p2  ;;  %s432_s25 = sshll.u32 %s3206_s24, 4  ;;  %s433_s25 = int_to_ptr.vmem [resolvable:$true] %s432_s25 }
  0x18   : > { %s458_s27 = sshll.u32 %s3207_s26, 4  ;;  %s2904_s30 = scalar_lea.vmem %s433_s25, 1024  ;;  %s459_s27 = int_to_ptr.vmem [resolvable:$true] %s458_s27 }
  0x19   : > { %s3871_s23 = scalar_select %p3328_p4, 1, 0 }
  0x1a   : > { %p2740_p5 = pneg %p3328_p4  ;;  %p2905_p8 = scmp.ne.s32.totalorder %s433_s25, %s2904_s30 }
  0x1b   : > { %p2912_p11 = scmp.lt.s32.totalorder %s433_s25, %s433_s25  ;;  %p2913_p12 = scmp.lt.s32.totalorder %s2904_s30, %s2904_s30 }
  0x1c   : > { %p3336_p6 = pnand %p2740_p5, %p3855_p1 }
  0x1d   : > { %p2914_p13 = por %p2913_p12, %p2912_p11 }
  0x1e   : > { %s3872_s28 = scalar_select %p3336_p6, 1, 0 }
  0x1f   : > { %p3342_p7 = pneg %p3336_p6 }
  0x21   : > { %s3873_s29 = scalar_select %p3342_p7, 1, 0 }
  0x22   : > { %p2907_p9 = pnand %p2905_p8, %p3342_p7 }
  0x24   : > { %p2908_p10 = pneg %p2907_p9 }
  0x26   : > { %p2915_p0 = pnand %p2914_p13, %p2908_p10 }
  0x28   : > { %2918 = shalt.err (!%p2915_p0)
}
  0x29   : > { %s3848_s16 = smov 64   ;;  %s3850_s17 = smov 4  }
  0x2a   : > { %s3874_s1 = sld [smem:[#allocation30_spill]]  ;;  %s2930_s15 = scalar_lea.vmem %s459_s27, 1024 }
  0x2b   : > { %p2931_p2 = scmp.ne.s32.totalorder %s459_s27, %s2930_s15  ;;  %p2938_p9 = scmp.lt.s32.totalorder %s459_s27, %s459_s27 }
  0x2c   : > { %p2939_p10 = scmp.lt.s32.totalorder %s2930_s15, %s2930_s15 }
  0x2d   : > { %p2933_p5 = pnand %p2931_p2, %p3342_p7 }
  0x2e   : > { %p2940_p11 = por %p2939_p10, %p2938_p9 }
  0x2f   : > { %p2934_p8 = pneg %p2933_p5 }
  0x30   : > { %2746 = dma.hbm_to_vmem [thread:$0]  (!%p3336_p6), %s3874_s1, 1024, %s433_s25, [#allocation8], %s3848_s16, %s3848_s16, %s3850_s17  }
  0x31   : > { %p2941_p12 = pnand %p2940_p11, %p2934_p8 }
  0x33   : > { %2944 = shalt.err (!%p2941_p12)
}
  0x34   : > { %s3875_s3 = sld [smem:[#allocation31_spill]]  ;;  %s3367_s15 = sadd.s32 1, %s3204_s21  }
  0x35   : > { %3876 = sst [smem:[#allocation27_spill]] %s3367_s15  ;;  %s211_s4 = sadd.s32 1, %s3200_s20 }
  0x36   : > { %s208_s25 = ssub.s32 %s3204_s21, %s3367_s15  ;;  %p218_p13 = scmp.ne.s32.totalorder %s3200_s20, %s3196_s19 }
  0x37   : > { %p209_p0 = scmp.eq.s32.totalorder %s208_s25, 0  ;;  %p219_p2 = scmp.eq.s32.totalorder %s3204_s21, 0 }
  0x38   : > { %p224_p5 = scmp.ne.s32.totalorder %s3196_s19, %s3192_s18  ;;  %p2775_p8 = scmp.lt.s32.totalorder %s3204_s21, 2 }
  0x39   : > { %s3379_s24 = scalar_select %p209_p0, %s3200_s20, %s211_s4  }
  0x3a   : > { %2752 = dma.hbm_to_vmem [thread:$0]  (!%p3336_p6), %s3875_s3, 1024, %s459_s27, [#allocation11], %s3848_s16, %s3848_s16, %s3850_s17  }
  0x3b   : > { %3877 = sst [smem:[#allocation28_spill]] %s3379_s24  ;;  %p220_p9 = por %p219_p2, %p218_p13 }
  0x3c   : > { %p3383_p10 = por %p3855_p1, %p224_p5  ;;  %s505_s30 = sand.u32 1, %s3204_s21  }
  0x3d   : > { %s3852_s27 = sand.u32 1, %s3200_s20   ;;  %s3394_s17 = sshll.u32 %s3204_s21, 10 }
  0x3e   : > { %s3878_s26 = scalar_select %p3383_p10, 1, 0 }
  0x3f   : > { %s3391_s16 = sshll.u32 %s3852_s27, 6  ;;  %s3400_s4 = scalar_lea.hbm %s3840_s8, %s3394_s17 }
  0x40   : > { %s509_s1 = scalar_lea.vmem [#allocation13], %s3391_s16  ;;  %p3405_p11 = pnand %p2775_p8, %p220_p9 }
  0x41   : > { %s516_s3 = sshll.u32 %s509_s1, 4  ;;  %s3210_s21 = smov [#allocation3]   ;;  %s3403_s3 = int_to_ptr.vmem [resolvable:$true] %s516_s3 }
  0x42   : > { %s3409_s27 = sshll.u32 %s3210_s21, 4  ;;  %s3411_s15 = scalar_lea.sflag [#allocation14], %s505_s30  ;;  %s420_s27 = int_to_ptr.vmem [resolvable:$true] %s3409_s27 }
  0x43   : > { %s2945_s25 = scalar_lea.hbm %s3400_s4, 1024  ;;  %p3417_p13 = pneg %p3405_p11 }
  0x44   : > { %p2946_p12 = scmp.ne.s32.totalorder %s3400_s4, %s2945_s25  ;;  %s2950_s7 = scalar_lea.hbm %s3840_s8, 2048 }
  0x45   : > { %p2951_p5 = scmp.lt.s32.totalorder %s3400_s4, %s3840_s8  ;;  %p2952_p8 = scmp.lt.s32.totalorder %s2950_s7, %s2945_s25 }
  0x46   : > { %p2948_p0 = pnand %p3417_p13, %p2946_p12 }
  0x47   : > { %p2953_p9 = por %p2952_p8, %p2951_p5 }
  0x48   : > { %p2949_p2 = pneg %p2948_p0 }
  0x4a   : > { %p2954_p3 = pnand %p2953_p9, %p2949_p2 }
  0x4c   : > { %2957 = shalt.err (!%p2954_p3)
}
  0x4d   : > { %s2958_s30 = scalar_lea.vmem %s3403_s3, 1024  ;;  %s3211_s11 = smov [#allocation13]  }
  0x4e   : > { %p2959_p1 = scmp.ne.s32.totalorder %s3403_s3, %s2958_s30  ;;  %s2963_s5 = sshll.u32 %s3211_s11, 4  ;;  %s2964_s5 = int_to_ptr.vmem [resolvable:$false] %s2963_s5 }
  0x4f   : > { %s2965_s1 = scalar_lea.vmem %s2964_s5, 2048  ;;  %p2966_p10 = scmp.lt.s32.totalorder %s3403_s3, %s2964_s5 }
  0x50   : > { %p2961_p12 = pnand %p2959_p1, %p3417_p13  ;;  %p2967_p4 = scmp.lt.s32.totalorder %s2965_s1, %s2958_s30 }
  0x52   : > { %p2962_p0 = pneg %p2961_p12  ;;  %p2968_p6 = por %p2967_p4, %p2966_p10 }
  0x54   : > { %p2969_p7 = pnand %p2968_p6, %p2962_p0 }
  0x56   : > { %2972 = shalt.err (!%p2969_p7)
}
  0x57   : > { %s3881_s7 = smov 4   ;;  %s3882_s13 = smov 64  }
  0x58   : > { %2762 = dma.hbm_to_vmem [thread:$0]  (!%p3405_p11), %s3400_s4, 1024, %s3403_s3, %s3411_s15, %s3882_s13, %s3882_s13, %s3881_s7  }
  0x59   : > { %s3212_s11 = smov [#allocation9]   ;;  %s2984_s21 = scalar_lea.vmem %s420_s27, 1024 }
  0x5a   : > { %s445_s25 = sshll.u32 %s3212_s11, 4  ;;  %p2985_p1 = scmp.ne.s32.totalorder %s420_s27, %s2984_s21  ;;  %s446_s25 = int_to_ptr.vmem [resolvable:$true] %s445_s25 }
  0x5b   : > { %p3883_p3 = scmp.ne.s32.totalorder %s3873_s29, 0  ;;  %p2992_p7 = scmp.lt.s32.totalorder %s420_s27, %s420_s27 }
  0x5c   : > { %p2993_p10 = scmp.lt.s32.totalorder %s2984_s21, %s2984_s21 }
  0x5d   : > { %p2987_p4 = pnand %p2985_p1, %p3883_p3 }
  0x5e   : > { %p2994_p2 = por %p2993_p10, %p2992_p7 }
  0x5f   : > { %p2988_p6 = pneg %p2987_p4 }
  0x61   : > { %p2995_p5 = pnand %p2994_p2, %p2988_p6 }
  0x63   : > { %2998 = shalt.err (!%p2995_p5)
}
  0x64   : > { %p3884_p8 = scmp.ne.s32.totalorder %s3872_s28, 0  ;;  %s3885_s0 = sld [smem:[#allocation29_spill]] }
  0x65   : > { %s3010_s4 = scalar_lea.vmem %s446_s25, 1024  ;;  %p3018_p1 = scmp.lt.s32.totalorder %s446_s25, %s446_s25 }
  0x66   : > { %p3011_p9 = scmp.ne.s32.totalorder %s446_s25, %s3010_s4  ;;  %p3019_p4 = scmp.lt.s32.totalorder %s3010_s4, %s3010_s4 }
  0x68   : > { %p3013_p12 = pnand %p3011_p9, %p3883_p3  ;;  %p3020_p6 = por %p3019_p4, %p3018_p1 }
  0x6a   : > { %2743 = dma.hbm_to_vmem [thread:$0]  (!%p3884_p8), %s3885_s0, 1024, %s420_s27, [#allocation4], %s3882_s13, %s3882_s13, %s3881_s7  }
  0x6b   : > { %p3014_p0 = pneg %p3013_p12 }
  0x6d   : > { %p3021_p7 = pnand %p3020_p6, %p3014_p0 }
  0x6f   : > { %3024 = shalt.err (!%p3021_p7)
}
  0x70   : > { %2749 = dma.hbm_to_vmem [thread:$0]  (!%p3884_p8), %s3834_s2, 1024, %s446_s25, [#allocation8], %s3882_s13, %s3882_s13, %s3881_s7  }
  0x71   : > { %s3213_s27 = smov [#allocation12]   ;;  %s494_s3 = sshll.u32 %s3846_s14, 4  ;;  %s495_s3 = int_to_ptr.vmem [resolvable:$true] %s494_s3 }
  0x72   : > { %s477_s11 = sshll.u32 %s3213_s27, 4  ;;  %s478_s11 = int_to_ptr.vmem [resolvable:$true] %s477_s11 }
  0x73   : > { %s3036_s4 = scalar_lea.vmem %s478_s11, 1024  ;;  %p3044_p9 = scmp.lt.s32.totalorder %s478_s11, %s478_s11 }
  0x74   : > { %p3037_p10 = scmp.ne.s32.totalorder %s478_s11, %s3036_s4  ;;  %p3045_p12 = scmp.lt.s32.totalorder %s3036_s4, %s3036_s4 }
  0x76   : > { %p3039_p2 = pnand %p3037_p10, %p3883_p3  ;;  %p3046_p0 = por %p3045_p12, %p3044_p9 }
  0x78   : > { %p3040_p5 = pneg %p3039_p2 }
  0x7a   : > { %p3047_p1 = pnand %p3046_p0, %p3040_p5 }
  0x7c   : > { %3050 = shalt.err (!%p3047_p1)
}
  0x7d   : > { %2755 = dma.hbm_to_vmem [thread:$0]  (!%p3884_p8), %s3838_s6, 1024, %s478_s11, [#allocation11], %s3882_s13, %s3882_s13, %s3881_s7  }
  0x7e   : > { %s3051_s1 = scalar_lea.vmem %s495_s3, 16  ;;  %p3059_p10 = scmp.lt.s32.totalorder %s495_s3, %s495_s3 }
  0x7f   : > { %p3052_p4 = scmp.ne.s32.totalorder %s495_s3, %s3051_s1  ;;  %p3060_p2 = scmp.lt.s32.totalorder %s3051_s1, %s3051_s1 }
  0x81   : > { %p3054_p6 = pnand %p3052_p4, %p3883_p3  ;;  %p3061_p9 = por %p3060_p2, %p3059_p10 }
  0x83   : > { %p3055_p7 = pneg %p3054_p6 }
  0x85   : > { %p3062_p5 = pnand %p3061_p9, %p3055_p7 }
  0x87   : > { %3065 = shalt.err (!%p3062_p5)
}
  0x88   : > { %s3214_s27 = smov [#allocation18]   ;;  %s3485_s11 = scalar_lea.hbm %s3842_s10, %s3394_s17 }
  0x89   : > { %2758 = dma.vmem_to_smem (!%p3884_p8), %s495_s3, 16, %s3214_s27, [#allocation6]  }
  0x8a   : > { %s536_s29 = scalar_lea.vmem [#allocation15], %s3391_s16  ;;  %s3066_s25 = scalar_lea.hbm %s3485_s11, 1024 }
  0x8b   : > { %s543_s4 = sshll.u32 %s536_s29, 4  ;;  %p3067_p3 = scmp.ne.s32.totalorder %s3485_s11, %s3066_s25  ;;  %s544_s4 = int_to_ptr.vmem [resolvable:$true] %s543_s4 }
  0x8c   : > { %s3071_s3 = scalar_lea.hbm %s3842_s10, 2048  ;;  %p3072_p8 = scmp.lt.s32.totalorder %s3485_s11, %s3842_s10 }
  0x8d   : > { %p3069_p12 = pnand %p3067_p3, %p3417_p13  ;;  %p3073_p1 = scmp.lt.s32.totalorder %s3071_s3, %s3066_s25 }
  0x8f   : > { %p3070_p0 = pneg %p3069_p12  ;;  %p3074_p4 = por %p3073_p1, %p3072_p8 }
  0x91   : > { %p3075_p6 = pnand %p3074_p4, %p3070_p0 }
  0x93   : > { %3078 = shalt.err (!%p3075_p6)
}
  0x94   : > { %s3079_s21 = scalar_lea.vmem %s544_s4, 1024  ;;  %s3215_s30 = smov [#allocation15]  }
  0x95   : > { %p3080_p7 = scmp.ne.s32.totalorder %s544_s4, %s3079_s21  ;;  %s3084_s29 = sshll.u32 %s3215_s30, 4  ;;  %s3085_s29 = int_to_ptr.vmem [resolvable:$false] %s3084_s29 }
  0x96   : > { %s3086_s0 = scalar_lea.vmem %s3085_s29, 2048  ;;  %p3087_p9 = scmp.lt.s32.totalorder %s544_s4, %s3085_s29 }
  0x97   : > { %p3082_p10 = pnand %p3080_p7, %p3417_p13  ;;  %p3088_p5 = scmp.lt.s32.totalorder %s3086_s0, %s3079_s21 }
  0x99   : > { %p3083_p2 = pneg %p3082_p10  ;;  %p3089_p3 = por %p3088_p5, %p3087_p9 }
  0x9b   : > { %p3090_p12 = pnand %p3089_p3, %p3083_p2 }
  0x9d   : > { %3093 = shalt.err (!%p3090_p12)
}
  0x9e   : > { %2765 = dma.hbm_to_vmem [thread:$0]  (!%p3405_p11), %s3485_s11, 1024, %s544_s4, %s3411_s15, %s3882_s13, %s3882_s13, %s3881_s7  }
  0x9f   : > { %s3512_s5 = scalar_lea.hbm %s3844_s12, %s3394_s17  ;;  %s563_s0 = scalar_lea.vmem [#allocation16], %s3391_s16 }
  0xa0   : > { %s570_s3 = sshll.u32 %s563_s0, 4  ;;  %s3886_s1 = sand.u32 1, %s3200_s20   ;;  %s3515_s3 = int_to_ptr.vmem [resolvable:$true] %s570_s3 }
  0xa1   : > { %s560_s27 = scalar_lea.sflag [#allocation17], %s3886_s1  ;;  %s3094_s21 = scalar_lea.hbm %s3512_s5, 1024 }
  0xa2   : > { %p3095_p0 = scmp.ne.s32.totalorder %s3512_s5, %s3094_s21  ;;  %s3099_s4 = scalar_lea.hbm %s3844_s12, 2048 }
  0xa3   : > { %p3100_p4 = scmp.lt.s32.totalorder %s3512_s5, %s3844_s12  ;;  %p3101_p6 = scmp.lt.s32.totalorder %s3099_s4, %s3094_s21 }
  0xa4   : > { %p3097_p8 = pnand %p3095_p0, %p3417_p13 }
  0xa5   : > { %p3102_p7 = por %p3101_p6, %p3100_p4 }
  0xa6   : > { %p3098_p1 = pneg %p3097_p8 }
  0xa8   : > { %p3103_p10 = pnand %p3102_p7, %p3098_p1 }
  0xaa   : > { %3106 = shalt.err (!%p3103_p10)
}
  0xab   : > { %s3107_s16 = scalar_lea.vmem %s3515_s3, 1024  ;;  %s3216_s29 = smov [#allocation16]  }
  0xac   : > { %p3108_p2 = scmp.ne.s32.totalorder %s3515_s3, %s3107_s16  ;;  %s3112_s25 = sshll.u32 %s3216_s29, 4  ;;  %s3113_s25 = int_to_ptr.vmem [resolvable:$false] %s3112_s25 }
  0xad   : > { %s3114_s28 = scalar_lea.vmem %s3113_s25, 2048  ;;  %p3115_p3 = scmp.lt.s32.totalorder %s3515_s3, %s3113_s25 }
  0xae   : > { %p3110_p9 = pnand %p3108_p2, %p3417_p13  ;;  %p3116_p12 = scmp.lt.s32.totalorder %s3114_s28, %s3107_s16 }
  0xb0   : > { %p3111_p5 = pneg %p3110_p9  ;;  %p3117_p0 = por %p3116_p12, %p3115_p3 }
  0xb2   : > { %p3118_p8 = pnand %p3117_p0, %p3111_p5 }
  0xb4   : > { %3121 = shalt.err (!%p3118_p8)
}
  0xb5   : > { %2768 = dma.hbm_to_vmem [thread:$0]  (!%p3405_p11), %s3512_s5, 1024, %s3515_s3, %s560_s27, %s3882_s13, %s3882_s13, %s3881_s7  }
  0xb6   : > { %p3887_p13 = scmp.ne.s32.totalorder %s3871_s23, 0 }
  0xb7   : > { %p3888_p1 = scmp.eq.s32.totalorder (!%p3887_p13), %s3322_s22, 0 }
  0xb8   : > { %588 = sbr.rel (%p3887_p13) target bundleno = 1660 (0x67c), region = 80 }
  0xbd   : > { %3163 = dma.done.wait (%p3888_p1), [#allocation4], 1024   ;;  %p3889_p4 = pmov %p3888_p1 }
  0xbe   : > { %p3890_p6 = pmov %p3888_p1 }
  0xbf   : > { %3165 = vsyncadd (%p3889_p4), [#allocation4], 4294966272 }
  0xc0   : > { %3167 = dma.done.wait (%p3890_p6), [#allocation8], 2048   ;;  %p3891_p7 = pmov %p3888_p1 }
  0xc1   : > { %p3892_p10 = pmov %p3888_p1 }
  0xc2   : > { %3169 = vsyncadd (%p3891_p7), [#allocation8], 4294965248 }
  0xc3   : > { %3171 = dma.done.wait (%p3892_p10), [#allocation11], 2048   ;;  %p3893_p11 = pmov %p3888_p1 }
  0xc4   : > { %s610_s23 = sand.u32 1, %s3322_s22   ;;  %s612_s24 = sand.u32 1, %s3196_s19  }
  0xc5   : > { %3173 = vsyncadd (%p3893_p11), [#allocation11], 4294965248  ;;  %s2275_s18 = sshll.u32 %s612_s24, 6  ;;  %s611_s7 = scalar_lea.sflag [#allocation14], %s610_s23 }
  0xc6   : > { %s3558_s13 = scalar_lea.vmem [#allocation13], %s2275_s18  ;;  %p3894_p2 = scmp.ne.s32.totalorder %s3878_s26, 0 }
  0xc8   : > { %3175 = dma.done.wait (%p3894_p2), %s611_s7, 2048  }
  0xc9   : > { %3177 = vsyncadd (%p3894_p2), %s611_s7, 4294965248  ;;  %s3564_s5 = scalar_lea.vmem [#allocation15], %s2275_s18  ;;  %s629_s0 = scalar_lea.sflag [#allocation17], %s612_s24 }
  0xca   : > { %s3566_s3 = scalar_lea.vmem [#allocation16], %s2275_s18 }
  0xcb   : > { %3179 = dma.done.wait (%p3894_p2), %s629_s0, 1024  }
  0xcc   : > { %3181 = vsyncadd (%p3894_p2), %s629_s0, 4294966272  ;;  %p3895_p9 = pmov %p3888_p1 }
  0xcd   : > { %p3896_p5 = pmov %p3888_p1 }
  0xce   : > { %3183 = dma.done.wait (%p3895_p9), [#allocation6], 16  }
  0xcf   : > { %3185 = vsyncadd (%p3896_p5), [#allocation6], 4294967280 }
  0xd0   : > { %641 = sfence }
  0xd1   : > { %p698_p3 = scmp.lt.s32.totalorder %s3322_s22, 1  ;;  %s3897_s4 = sld [smem:[#allocation35_spill]] }
  0xd2   : > { %s3898_s29 = sld [smem:[#allocation36_spill]]  ;;  %p3899_p12 = scmp.ne.s32.totalorder %s3322_s22, 0 }
  0xd3   : > { %s3580_s1 = scalar_select %p698_p3, %s3322_s22, 1 }
  0xd4   : > { %711 = sbr.rel (%p3899_p12) target bundleno = 460 (0x1cc), region = 120  ;;  %s3900_s24 = sld [smem:[#allocation34_spill]] (!%p3899_p12) }
  0xd5   : > { %s700_s26 = scalar_lea.vmem %s3841_s9, %s3580_s1 }
  0xd7   : > { %s703_s17 = scalar_lea.vmem %s3897_s4, %s3580_s1 }
  0xd8   : > { %s706_s25 = scalar_lea.vmem %s3898_s29, %s3580_s1 }
  0xd9   : > { %v2828_v0 = vld [vmem:[#allocation12 + $0x38] sm:$0xff]   ;;  %v2829_v1 = vld [vmem:[#allocation12 + $0x30] sm:$0xff]   ;;  %v2830_v2 = vld [vmem:[#allocation12 + $0x28] sm:$0xff]  }
  0xda   : > { %2462 = vmatprep.subr.bf16.mxu0 %v2828_v0  ;;  %2674 = vmatprep.subr.bf16.mxu1 %v2828_v0  ;;  %v2831_v3 = vld [vmem:[#allocation12 + $0x20] sm:$0xff]   ;;  %v2832_v6 = vld [vmem:[#allocation12 + $0x18] sm:$0xff]   ;;  %v2833_v7 = vld [vmem:[#allocation12 + $0x10] sm:$0xff]  }
  0xdb   : > { %2463 = vmatpush3.bf16.msra.mxu0 %v2828_v0  ;;  %2682 = vmatpush3.bf16.msra.mxu1 %v2828_v0  ;;  %v2836_v4 = vld [vmem:[#allocation3] sm:$0xff]   ;;  %v2834_v8 = vld [vmem:[#allocation12 + $0x8] sm:$0xff]   ;;  %v2840_v12 = vld [vmem:[#allocation3 + $0x10] sm:$0xff]  }
  0xdc   : > { %2464 = vmatprep.subr.bf16.mxu0 %v2829_v1  ;;  %2675 = vmatprep.subr.bf16.mxu1 %v2829_v1  ;;  %v2837_v5 = vld [vmem:[#allocation3 + $0x20] sm:$0xff]   ;;  %v2838_v10 = vld [vmem:[#allocation3 + $0x8] sm:$0xff]   ;;  %v2841_v13 = vld [vmem:[#allocation3 + $0x30] sm:$0xff]  }
  0xdd   : > { %2478 = vmatprep.mubr.bf16.mxu0 %v2836_v4  ;;  %2486 = vmatprep.mubr.bf16.mxu1 %v2837_v5  ;;  %v2835_v9 = vld [vmem:[#allocation12] sm:$0xff]   ;;  %v2839_v11 = vld [vmem:[#allocation3 + $0x28] sm:$0xff]   ;;  %v2842_v14 = vld [vmem:[#allocation3 + $0x18] sm:$0xff]  }
  0xde   : > { %v2843_v15 = vld [vmem:[#allocation3 + $0x38] sm:$0xff]   ;;  %v2280_v16 = vld [vmem:[%s3900_s24] ss:$0 sm:$0xff] }
  0xdf   : > { %2465 = vmatpush3.bf16.msra.mxu0 %v2829_v1  ;;  %2683 = vmatpush3.bf16.msra.mxu1 %v2829_v1 }
  0xe0   : > { %2466 = vmatprep.subr.bf16.mxu0 %v2830_v2  ;;  %2676 = vmatprep.subr.bf16.mxu1 %v2830_v2 }
  0xe3   : > { %2467 = vmatpush3.bf16.msra.mxu0 %v2830_v2  ;;  %2684 = vmatpush3.bf16.msra.mxu1 %v2830_v2 }
  0xe4   : > { %2468 = vmatprep.subr.bf16.mxu0 %v2831_v3  ;;  %2677 = vmatprep.subr.bf16.mxu1 %v2831_v3 }
  0xe7   : > { %2469 = vmatpush3.bf16.msra.mxu0 %v2831_v3  ;;  %2685 = vmatpush3.bf16.msra.mxu1 %v2831_v3 }
  0xe8   : > { %2470 = vmatprep.subr.bf16.mxu0 %v2832_v6  ;;  %2678 = vmatprep.subr.bf16.mxu1 %v2832_v6 }
  0xeb   : > { %2471 = vmatpush3.bf16.msra.mxu0 %v2832_v6  ;;  %2686 = vmatpush3.bf16.msra.mxu1 %v2832_v6 }
  0xec   : > { %2472 = vmatprep.subr.bf16.mxu0 %v2833_v7  ;;  %2679 = vmatprep.subr.bf16.mxu1 %v2833_v7 }
  0xef   : > { %2473 = vmatpush3.bf16.msra.mxu0 %v2833_v7  ;;  %2687 = vmatpush3.bf16.msra.mxu1 %v2833_v7 }
  0xf0   : > { %2474 = vmatprep.subr.bf16.mxu0 %v2834_v8  ;;  %2680 = vmatprep.subr.bf16.mxu1 %v2834_v8 }
  0xf3   : > { %2475 = vmatpush3.bf16.msra.mxu0 %v2834_v8  ;;  %2688 = vmatpush3.bf16.msra.mxu1 %v2834_v8 }
  0xf4   : > { %2476 = vmatprep.subr.bf16.mxu0 %v2835_v9  ;;  %2681 = vmatprep.subr.bf16.mxu1 %v2835_v9 }
  0xf7   : > { %2477 = vmatpush3.bf16.msra.mxu0 %v2835_v9  ;;  %2689 = vmatpush3.bf16.msra.mxu1 %v2835_v9 }
  0xfa   : > { %2479 = vmatmul.mubr.bf16.vlgmr.msra.gmra.mxu0 %v2838_v10  ;;  %2487 = vmatmul.mubr.bf16.vlgmr.msra.gmra.mxu1 %v2839_v11 }
  0xfb   : > { %2482 = vmatprep.mubr.bf16.mxu0 %v2840_v12  ;;  %2490 = vmatprep.mubr.bf16.mxu1 %v2841_v13 }
 0x102   : > { %2483 = vmatmul.mubr.bf16.gmra.mxu0 %v2842_v14  ;;  %2491 = vmatmul.mubr.bf16.gmra.mxu1 %v2843_v15 }
 0x1ba   : > { %v2480_v17 = vpop.f32.mrf.mxu0  ;;  %v2488_v18 = vpop.f32.mrf.mxu1 }
 0x1bb   : > { %v890_v19 = vadd.f32 %v2480_v17, %v2280_v16  ;;  %v922_v20 = vadd.f32 %v2488_v18, %v2280_v16 }
 0x1bc   : > { %v881_v21 = vpop.f32.mrf.mxu0  ;;  %v913_v22 = vpop.f32.mrf.mxu1 }
 0x1bd   : > { %946 = vst [vmem:[#allocation2 + $0x58] sm:$0xff] %v890_v19  ;;  %954 = vst [vmem:[#allocation2 + $0x10] sm:$0xff] %v922_v20  ;;  %v882_v23 = vadd.f32 %v2280_v16, %v881_v21  ;;  %v914_v24 = vadd.f32 %v2280_v16, %v913_v22 }
 0x1be   : > { %v2481_v25 = vpop.f32.mrf.mxu0  ;;  %v2489_v26 = vpop.f32.mrf.mxu1 }
 0x1bf   : > { %944 = vst [vmem:[#allocation2 + $0x30] sm:$0xff] %v882_v23  ;;  %952 = vst [vmem:[#allocation2 + $0x40] sm:$0xff] %v914_v24  ;;  %v893_v27 = vadd.f32 %v2481_v25, %v2280_v16  ;;  %v925_v28 = vadd.f32 %v2489_v26, %v2280_v16 }
 0x1c0   : > { %v884_v29 = vpop.f32.mrf.mxu0  ;;  %v916_v30 = vpop.f32.mrf.mxu1 }
 0x1c1   : > { %947 = vst [vmem:[#allocation2 + $0x18] sm:$0xff] %v893_v27  ;;  %955 = vst [vmem:[#allocation2 + $0x38] sm:$0xff] %v925_v28  ;;  %v885_v31 = vadd.f32 %v2280_v16, %v884_v29  ;;  %v917_v32 = vadd.f32 %v2280_v16, %v916_v30 }
 0x1c2   : > { %v2484_v33 = vpop.f32.mrf.mxu0  ;;  %v2492_v34 = vpop.f32.mrf.mxu1 }
 0x1c3   : > { %945 = vst [vmem:[#allocation2] sm:$0xff] %v885_v31  ;;  %953 = vst [vmem:[#allocation2 + $0x20] sm:$0xff] %v917_v32  ;;  %v906_v35 = vadd.f32 %v2484_v33, %v2280_v16  ;;  %v938_v36 = vadd.f32 %v2492_v34, %v2280_v16 }
 0x1c4   : > { %v897_v37 = vpop.f32.mrf.mxu0  ;;  %v929_v38 = vpop.f32.mrf.mxu1 }
 0x1c5   : > { %950 = vst [vmem:[#allocation2 + $0x8] sm:$0xff] %v906_v35  ;;  %958 = vst [vmem:[#allocation2 + $0x78] sm:$0xff] %v938_v36  ;;  %v898_v39 = vadd.f32 %v2280_v16, %v897_v37  ;;  %v930_v40 = vadd.f32 %v2280_v16, %v929_v38 }
 0x1c6   : > { %v2485_v41 = vpop.f32.mrf.mxu0  ;;  %v2493_v42 = vpop.f32.mrf.mxu1 }
 0x1c7   : > { %948 = vst [vmem:[#allocation2 + $0x50] sm:$0xff] %v898_v39  ;;  %956 = vst [vmem:[#allocation2 + $0x60] sm:$0xff] %v930_v40  ;;  %v909_v43 = vadd.f32 %v2485_v41, %v2280_v16  ;;  %v941_v44 = vadd.f32 %v2493_v42, %v2280_v16 }
 0x1c8   : > { %v900_v45 = vpop.f32.mrf.mxu0  ;;  %v932_v46 = vpop.f32.mrf.mxu1 }
 0x1c9   : > { %951 = vst [vmem:[#allocation2 + $0x48] sm:$0xff] %v909_v43  ;;  %959 = vst [vmem:[#allocation2 + $0x28] sm:$0xff] %v941_v44  ;;  %v901_v47 = vadd.f32 %v2280_v16, %v900_v45  ;;  %v933_v48 = vadd.f32 %v2280_v16, %v932_v46 }
 0x1cb   : > { %949 = vst [vmem:[#allocation2 + $0x68] sm:$0xff] %v901_v47  ;;  %957 = vst [vmem:[#allocation2 + $0x70] sm:$0xff] %v933_v48 }
 0x1cc PF: > { %v2844_v49 = vld [vmem:[%s3558_s13 + $0x38] sm:$0xff]   ;;  %v2845_v53 = vld [vmem:[%s3558_s13 + $0x30] sm:$0xff]   ;;  %v2846_v57 = vld [vmem:[%s3558_s13 + $0x28] sm:$0xff]   ;;  %p2348_p0 = scmp.ge.s32.totalorder %s3322_s22, 1 }
 0x1cd   : > { %v3600_v50 = vld [vmem:[#allocation2 + $0x78] sm:$0xff]  ;;  %2494 = vmatprep.subr.bf16.mxu0 %v2844_v49  ;;  %v3614_v58 = vld [vmem:[#allocation2 + $0x10] sm:$0xff]  ;;  %v3620_v61 = vld [vmem:[#allocation2 + $0x40] sm:$0xff] }
 0x1ce   : > { %v3607_v54 = vld [vmem:[#allocation2 + $0x60] sm:$0xff]  ;;  %2495 = vmatpush3.bf16.msra.mxu0 %v2844_v49  ;;  %v3616_v59 = vld [vmem:[#allocation2 + $0x38] sm:$0xff]  ;;  %v3627_v1 = vld [vmem:[#allocation2 + $0x8] sm:$0xff] }
 0x1cf   : > { %2496 = vmatprep.subr.bf16.mxu0 %v2845_v53  ;;  %v981_v60 = vpack.c.bf16 %v3616_v59, %v3614_v58  ;;  %v3622_v62 = vld [vmem:[#allocation2 + $0x20] sm:$0xff]  ;;  %v2848_v3 = vld [vmem:[%s3558_s13 + $0x18] sm:$0xff]   ;;  %v3632_v4 = vld [vmem:[#allocation2 + $0x50] sm:$0xff] }
 0x1d0   : > { %v3602_v51 = vld [vmem:[#allocation2 + $0x28] sm:$0xff]  ;;  %v2847_v63 = vld [vmem:[%s3558_s13 + $0x20] sm:$0xff]   ;;  %v980_v0 = vpack.c.bf16 %v3622_v62, %v3620_v61  ;;  %v2849_v9 = vld [vmem:[%s3558_s13 + $0x10] sm:$0xff]  }
 0x1d1   : > { %v983_v52 = vpack.c.bf16 %v3602_v51, %v3600_v50  ;;  %v3629_v2 = vld [vmem:[#allocation2 + $0x48] sm:$0xff]  ;;  %v2852_v7 = vld [vmem:[#allocation7] sm:$0xff]   ;;  %v3641_v11 = vld [vmem:[#allocation2 + $0x58] sm:$0xff] }
 0x1d2   : > { %v3609_v55 = vld [vmem:[#allocation2 + $0x70] sm:$0xff]  ;;  %2497 = vmatpush3.bf16.msra.mxu0 %v2845_v53  ;;  %v3634_v5 = vld [vmem:[#allocation2 + $0x68] sm:$0xff]  ;;  %v979_v6 = vpack.c.bf16 %v3629_v2, %v3627_v1  ;;  %v2853_v8 = vld [vmem:[#allocation9] sm:$0xff]   ;;  %2510 = vmatprep.mubr.bf16.mxu0 %v2852_v7 }
 0x1d3   : > { %2526 = vmatprep.subr.bf16.mxu1 %v983_v52  ;;  %v982_v56 = vpack.c.bf16 %v3609_v55, %v3607_v54  ;;  %2498 = vmatprep.subr.bf16.mxu0 %v2846_v57  ;;  %v978_v10 = vpack.c.bf16 %v3634_v5, %v3632_v4  ;;  %v3643_v12 = vld [vmem:[#allocation2 + $0x18] sm:$0xff]  ;;  %v2850_v13 = vld [vmem:[%s3558_s13 + $0x8] sm:$0xff]   ;;  %v3648_v15 = vld [vmem:[#allocation2 + $0x30] sm:$0xff] }
 0x1d4   : > { %2527 = vmatpush3.bf16.msra.mxu1 %v983_v52  ;;  %2542 = vmatprep.mubr.bf16.mxu1 %v2853_v8  ;;  %v977_v14 = vpack.c.bf16 %v3643_v12, %v3641_v11  ;;  %v3650_v16 = vld [vmem:[#allocation2] sm:$0xff]  ;;  %v2854_v19 = vld [vmem:[#allocation7 + $0x8] sm:$0xff]   ;;  %v2856_v20 = vld [vmem:[#allocation7 + $0x10] sm:$0xff]  }
 0x1d5   : > { %2528 = vmatprep.subr.bf16.mxu1 %v982_v56  ;;  %v2851_v17 = vld [vmem:[%s3558_s13] sm:$0xff]   ;;  %v976_v18 = vpack.c.bf16 %v3650_v16, %v3648_v15  ;;  %v2855_v21 = vld [vmem:[#allocation9 + $0x8] sm:$0xff]   ;;  %v2857_v22 = vld [vmem:[#allocation9 + $0x10] sm:$0xff]   ;;  %s1393_s13 = sld [smem:[#allocation18 + %s3322_s22]] }
 0x1d6   : > { %2499 = vmatpush3.bf16.msra.mxu0 %v2846_v57  ;;  %v2858_v23 = vld [vmem:[#allocation7 + $0x18] sm:$0xff]   ;;  %v2860_v24 = vld [vmem:[#allocation7 + $0x20] sm:$0xff]   ;;  %v2862_v27 = vld [vmem:[#allocation7 + $0x28] sm:$0xff]  }
 0x1d7   : > { %2500 = vmatprep.subr.bf16.mxu0 %v2847_v63  ;;  %v2859_v25 = vld [vmem:[#allocation9 + $0x18] sm:$0xff]   ;;  %v2861_v26 = vld [vmem:[#allocation9 + $0x20] sm:$0xff]   ;;  %v2864_v28 = vld [vmem:[#allocation7 + $0x30] sm:$0xff]  }
 0x1d8   : > { %2529 = vmatpush3.bf16.msra.mxu1 %v982_v56  ;;  %v2863_v29 = vld [vmem:[#allocation9 + $0x28] sm:$0xff]   ;;  %v2865_v30 = vld [vmem:[#allocation9 + $0x30] sm:$0xff]   ;;  %v2866_v31 = vld [vmem:[#allocation7 + $0x38] sm:$0xff]  }
 0x1d9   : > { %2530 = vmatprep.subr.bf16.mxu1 %v981_v60  ;;  %v2867_v32 = vld [vmem:[#allocation9 + $0x38] sm:$0xff]   ;;  %v2868_v33 = vld [vmem:[#allocation10] sm:$0xff]   ;;  %v2877_v35 = vld [vmem:[%s3564_s5 + $0x30] sm:$0xff]  }
 0x1da   : > { %2501 = vmatpush3.bf16.msra.mxu0 %v2847_v63  ;;  %v2876_v34 = vld [vmem:[%s3564_s5 + $0x38] sm:$0xff]   ;;  %v2878_v36 = vld [vmem:[%s3564_s5 + $0x28] sm:$0xff]   ;;  %v2879_v37 = vld [vmem:[%s3564_s5 + $0x20] sm:$0xff]  }
 0x1db   : > { %2502 = vmatprep.subr.bf16.mxu0 %v2848_v3  ;;  %v2880_v38 = vld [vmem:[%s3564_s5 + $0x18] sm:$0xff]  }
 0x1dc   : > { %2531 = vmatpush3.bf16.msra.mxu1 %v981_v60 }
 0x1dd   : > { %2532 = vmatprep.subr.bf16.mxu1 %v980_v0 }
 0x1de   : > { %2503 = vmatpush3.bf16.msra.mxu0 %v2848_v3 }
 0x1df   : > { %2504 = vmatprep.subr.bf16.mxu0 %v2849_v9 }
 0x1e0   : > { %2533 = vmatpush3.bf16.msra.mxu1 %v980_v0 }
 0x1e1   : > { %2534 = vmatprep.subr.bf16.mxu1 %v979_v6 }
 0x1e2   : > { %2505 = vmatpush3.bf16.msra.mxu0 %v2849_v9 }
 0x1e3   : > { %2506 = vmatprep.subr.bf16.mxu0 %v2850_v13 }
 0x1e4   : > { %2535 = vmatpush3.bf16.msra.mxu1 %v979_v6 }
 0x1e5   : > { %2536 = vmatprep.subr.bf16.mxu1 %v978_v10 }
 0x1e6   : > { %2507 = vmatpush3.bf16.msra.mxu0 %v2850_v13 }
 0x1e7   : > { %2508 = vmatprep.subr.bf16.mxu0 %v2851_v17 }
 0x1e8   : > { %2537 = vmatpush3.bf16.msra.mxu1 %v978_v10  ;;  %v3683_v10 = vld [vmem:[%s700_s26] ss:$0 sm:$0xff] }
 0x1e9   : > { %2538 = vmatprep.subr.bf16.mxu1 %v977_v14 }
 0x1ea   : > { %2509 = vmatpush3.bf16.msra.mxu0 %v2851_v17 }
 0x1ec   : > { %2539 = vmatpush3.bf16.msra.mxu1 %v977_v14 }
 0x1ed   : > { %2540 = vmatprep.subr.bf16.mxu1 %v976_v18  ;;  %2511 = vmatmul.mubr.bf16.vlgmr.msra.gmra.mxu0 %v2854_v19 }
 0x1ee   : > { %2514 = vmatprep.mubr.bf16.mxu0 %v2856_v20 }
 0x1f0   : > { %2541 = vmatpush3.bf16.msra.mxu1 %v976_v18 }
 0x1f1   : > { %2590 = vmatprep.subr.bf16.mxu1 %v2876_v34 }
 0x1f3   : > { %2543 = vmatmul.mubr.bf16.vlgmr.msra.gmra.mxu1 %v2855_v21 }
 0x1f4   : > { %2546 = vmatprep.mubr.bf16.mxu1 %v2857_v22  ;;  %2591 = vmatpush3.bf16.msra.mxu1 %v2876_v34 }
 0x1f5   : > { %2515 = vmatmul.mubr.bf16.gmra.mxu0 %v2858_v23  ;;  %2592 = vmatprep.subr.bf16.mxu1 %v2877_v35 }
 0x1f6   : > { %2518 = vmatprep.mubr.bf16.mxu0 %v2860_v24 }
 0x1f8   : > { %2593 = vmatpush3.bf16.msra.mxu1 %v2877_v35 }
 0x1f9   : > { %2594 = vmatprep.subr.bf16.mxu1 %v2878_v36 }
 0x1fb   : > { %2547 = vmatmul.mubr.bf16.gmra.mxu1 %v2859_v25 }
 0x1fc   : > { %2550 = vmatprep.mubr.bf16.mxu1 %v2861_v26  ;;  %2595 = vmatpush3.bf16.msra.mxu1 %v2878_v36 }
 0x1fd   : > { %2519 = vmatmul.mubr.bf16.gmra.mxu0 %v2862_v27  ;;  %2596 = vmatprep.subr.bf16.mxu1 %v2879_v37 }
 0x1fe   : > { %2522 = vmatprep.mubr.bf16.mxu0 %v2864_v28 }
 0x200   : > { %2597 = vmatpush3.bf16.msra.mxu1 %v2879_v37 }
 0x201   : > { %2598 = vmatprep.subr.bf16.mxu1 %v2880_v38 }
 0x203   : > { %2551 = vmatmul.mubr.bf16.gmra.mxu1 %v2863_v29 }
 0x204   : > { %2554 = vmatprep.mubr.bf16.mxu1 %v2865_v30  ;;  %2599 = vmatpush3.bf16.msra.mxu1 %v2880_v38 }
 0x205   : > { %2523 = vmatmul.mubr.bf16.gmra.mxu0 %v2866_v31 }
 0x206   : > { %2574 = vmatprep.mubr.bf16.mxu0 %v2868_v33 }
 0x20b   : > { %2555 = vmatmul.mubr.bf16.gmra.mxu1 %v2867_v32 }
 0x2ad   : > { %v3660_v39 = vpop.f32.mrf.mxu0 }
 0x2af   : > { %v3664_v41 = vpop.f32.mrf.mxu0 }
 0x2b1   : > { %v3668_v43 = vpop.f32.mrf.mxu0 }
 0x2b3   : > { %v3662_v40 = vpop.f32.mrf.mxu1  ;;  %v3672_v45 = vpop.f32.mrf.mxu0 }
 0x2b5   : > { %v3666_v42 = vpop.f32.mrf.mxu1  ;;  %v2516_v47 = vpop.f32.mrf.mxu0 }
 0x2b7   : > { %v3670_v44 = vpop.f32.mrf.mxu1  ;;  %v1169_v49 = vpop.f32.mrf.mxu0 }
 0x2b9   : > { %v3674_v46 = vpop.f32.mrf.mxu1  ;;  %v2517_v53 = vpop.f32.mrf.mxu0 }
 0x2bb   : > { %v2548_v48 = vpop.f32.mrf.mxu1  ;;  %v1172_v57 = vpop.f32.mrf.mxu0 }
 0x2bd   : > { %v3676_v52 = vpop.f32.mrf.mxu1  ;;  %v2520_v63 = vpop.f32.mrf.mxu0 }
 0x2be   : > { %v1194_v26 = vadd.f32 %v2520_v63, %v3683_v10  ;;  %v1181_v63 = vadd.f32 %v2517_v53, %v3683_v10 }
 0x2bf   : > { %v2549_v56 = vpop.f32.mrf.mxu1  ;;  %v1185_v3 = vpop.f32.mrf.mxu0 }
 0x2c1   : > { %v1333_v60 = vpop.f32.mrf.mxu1  ;;  %v2521_v7 = vpop.f32.mrf.mxu0 }
 0x2c2   : > { %v1197_v21 = vadd.f32 %v2521_v7, %v3683_v10  ;;  %v1186_v7 = vadd.f32 %v3683_v10, %v1185_v3 }
 0x2c3   : > { %v2552_v0 = vpop.f32.mrf.mxu1  ;;  %v1188_v9 = vpop.f32.mrf.mxu0 }
 0x2c4   : > { %v1189_v34 = vadd.f32 %v3683_v10, %v1188_v9  ;;  %v1355_v38 = vadd.f32 %v2552_v0, %v1194_v26  ;;  %v1173_v0 = vadd.f32 %v3683_v10, %v1172_v57  ;;  %v1170_v26 = vadd.f32 %v3683_v10, %v1169_v49 }
 0x2c5   : > { %v1346_v6 = vpop.f32.mrf.mxu1  ;;  %v2524_v14 = vpop.f32.mrf.mxu0  ;;  %v1157_v49 = vadd.f32 %v3683_v10, %v3672_v45 }
 0x2c6   : > { %v1210_v17 = vadd.f32 %v2524_v14, %v3683_v10  ;;  %v1347_v9 = vadd.f32 %v1346_v6, %v1186_v7  ;;  %v1331_v57 = vadd.f32 %v3676_v52, %v1170_v26  ;;  %v2881_v7 = vld [vmem:[%s3564_s5 + $0x10] sm:$0xff]  }
 0x2c7   : > { %v2553_v8 = vpop.f32.mrf.mxu1  ;;  %v1201_v19 = vpop.f32.mrf.mxu0  ;;  %2600 = vmatprep.subr.bf16.mxu1 %v2881_v7 }
 0x2c8   : > { %v1202_v20 = vadd.f32 %v3683_v10, %v1201_v19  ;;  %v1358_v32 = vadd.f32 %v2553_v8, %v1197_v21  ;;  %v1178_v8 = vadd.f32 %v2516_v47, %v3683_v10  ;;  %v1387_v21 = vmax.f32 %v1355_v38, 0.0  ;;  %v2875_v38 = vld [vmem:[#allocation10 + $0x38] sm:$0xff]   ;;  %2601 = vmatpush3.bf16.msra.mxu1 %v2881_v7 }
 0x2c9   : > { %v1349_v13 = vpop.f32.mrf.mxu1  ;;  %v2525_v23 = vpop.f32.mrf.mxu0  ;;  %v1385_v53 = vmax.f32 %v1347_v9, 0.0 }
 0x2ca   : > { %v1213_v25 = vadd.f32 %v2525_v23, %v3683_v10  ;;  %v1388_v19 = vmax.f32 %v1358_v32, 0.0  ;;  %v1342_v23 = vadd.f32 %v2549_v56, %v1181_v63  ;;  %v1162_v56 = vadd.f32 %v3660_v39, %v3683_v10  ;;  %v2885_v63 = vld [vmem:[%s3566_s3 + $0x30] sm:$0xff]  }
 0x2cb   : > { %v2556_v18 = vpop.f32.mrf.mxu1  ;;  %v1204_v28 = vpop.f32.mrf.mxu0  ;;  %v1318_v32 = vadd.f32 %v3674_v46, %v1157_v49  ;;  %v2871_v46 = vld [vmem:[#allocation10 + $0x18] sm:$0xff]  }
 0x2cc   : > { %v1371_v24 = vadd.f32 %v2556_v18, %v1210_v17  ;;  %v1205_v31 = vadd.f32 %v3683_v10, %v1204_v28  ;;  %v1334_v28 = vadd.f32 %v1333_v60, %v1173_v0  ;;  %v1154_v60 = vadd.f32 %v3683_v10, %v3664_v41  ;;  %v2869_v41 = vld [vmem:[#allocation10 + $0x8] sm:$0xff]  }
 0x2cd   : > { %v1362_v22 = vpop.f32.mrf.mxu1 }
 0x2ce   : > { %v1363_v29 = vadd.f32 %v1362_v22, %v1202_v20  ;;  %v1391_v35 = vmax.f32 %v1371_v24, 0.0  ;;  %v1350_v20 = vadd.f32 %v1349_v13, %v1189_v34  ;;  %v1433_v24 = vpack.c.bf16 %v1388_v19, %v1387_v21  ;;  %v2886_v19 = vld [vmem:[%s3566_s3 + $0x28] sm:$0xff]  }
 0x2cf   : > { %v2557_v27 = vpop.f32.mrf.mxu1  ;;  %v1165_v13 = vadd.f32 %v3668_v43, %v3683_v10  ;;  %v1323_v43 = vadd.f32 %v3662_v40, %v1162_v56  ;;  %v1378_v34 = vmax.f32 %v1318_v32, 0.0  ;;  %v2870_v10 = vld [vmem:[#allocation10 + $0x10] sm:$0xff]  }
 0x2d0   : > { %v1374_v30 = vadd.f32 %v2557_v27, %v1213_v25  ;;  %v1389_v14 = vmax.f32 %v1363_v29, 0.0  ;;  %v1386_v3 = vmax.f32 %v1350_v20, 0.0  ;;  %v1339_v25 = vadd.f32 %v2548_v48, %v1178_v8  ;;  %v2887_v20 = vld [vmem:[%s3566_s3 + $0x20] sm:$0xff]  }
 0x2d1   : > { %v1365_v33 = vpop.f32.mrf.mxu1  ;;  %v1384_v27 = vmax.f32 %v1342_v23, 0.0  ;;  %v1326_v48 = vadd.f32 %v3670_v44, %v1165_v13  ;;  %v1315_v44 = vadd.f32 %v3666_v42, %v1154_v60  ;;  %v2873_v42 = vld [vmem:[#allocation10 + $0x28] sm:$0xff]  }
 0x2d2   : > { %v1392_v36 = vmax.f32 %v1374_v30, 0.0  ;;  %v1366_v37 = vadd.f32 %v1365_v33, %v1205_v31  ;;  %v1432_v47 = vpack.c.bf16 %v1386_v3, %v1385_v53  ;;  %v1383_v6 = vmax.f32 %v1339_v25, 0.0 }
 0x2d3   : > { %v1382_v30 = vmax.f32 %v1334_v28, 0.0  ;;  %v1381_v31 = vmax.f32 %v1331_v57, 0.0  ;;  %v1380_v39 = vmax.f32 %v1326_v48, 0.0  ;;  %v1379_v33 = vmax.f32 %v1323_v43, 0.0 }
 0x2d4   : > { %v1435_v17 = vpack.c.bf16 %v1392_v36, %v1391_v35  ;;  %v1390_v18 = vmax.f32 %v1366_v37, 0.0  ;;  %v1431_v29 = vpack.c.bf16 %v1384_v27, %v1383_v6  ;;  %v1377_v35 = vmax.f32 %v1315_v44, 0.0  ;;  %v2872_v36 = vld [vmem:[#allocation10 + $0x20] sm:$0xff]   ;;  %v2874_v37 = vld [vmem:[#allocation10 + $0x30] sm:$0xff]  }
 0x2d5   : > { %v1430_v52 = vpack.c.bf16 %v1382_v30, %v1381_v31  ;;  %v1429_v45 = vpack.c.bf16 %v1380_v39, %v1379_v33 }
 0x2d6   : > { %v1434_v22 = vpack.c.bf16 %v1390_v18, %v1389_v14  ;;  %2558 = vmatprep.subr.bf16.mxu0 %v1435_v17  ;;  %v1428_v40 = vpack.c.bf16 %v1378_v34, %v1377_v35  ;;  %v2882_v14 = vld [vmem:[%s3564_s5 + $0x8] sm:$0xff]   ;;  %v2884_v18 = vld [vmem:[%s3566_s3 + $0x38] sm:$0xff]  }
 0x2d7   : > { %2559 = vmatpush3.bf16.msra.mxu0 %v1435_v17  ;;  %2602 = vmatprep.subr.bf16.mxu1 %v2882_v14  ;;  %v2883_v17 = vld [vmem:[%s3564_s5] sm:$0xff]   ;;  %s1394_s5 = sadd.f32 1.0, %s1393_s13 }
 0x2d8   : > { %2560 = vmatprep.subr.bf16.mxu0 %v1434_v22  ;;  %2603 = vmatpush3.bf16.msra.mxu1 %v2882_v14 }
 0x2d9   : > { %2604 = vmatprep.subr.bf16.mxu1 %v2883_v17  ;;  %v1395_v21 = vstv %s1394_s5 }
 0x2da   : > { %v1399_v23 = vmul.f32 %v1395_v21, %v3643_v12  ;;  %v1396_v0 = vmul.f32 %v1395_v21, %v3648_v15  ;;  %v1398_v3 = vmul.f32 %v1395_v21, %v3641_v11  ;;  %v1403_v48 = vmul.f32 %v1395_v21, %v3629_v2 }
 0x2db   : > { %2561 = vmatpush3.bf16.msra.mxu0 %v1434_v22  ;;  %v3718_v22 = vld [vmem:[%s3566_s3 + $0x18] sm:$0xff]   ;;  %v1400_v12 = vmul.f32 %v1395_v21, %v3632_v4  ;;  %v1401_v15 = vmul.f32 %v1395_v21, %v3634_v5  ;;  %v1407_v4 = vmul.f32 %v1395_v21, %v3616_v59  ;;  %v1404_v5 = vmul.f32 %v1395_v21, %v3620_v61 }
 0x2dc   : > { %2562 = vmatprep.subr.bf16.mxu0 %v1433_v24  ;;  %2605 = vmatpush3.bf16.msra.mxu1 %v2883_v17  ;;  %v1411_v61 = vmul.f32 %v1395_v21, %v3602_v51 }
 0x2dd   : > { %2690 = vmatprep.subr.bf16.mxu1 %v2884_v18 }
 0x2df   : > { %2563 = vmatpush3.bf16.msra.mxu0 %v1433_v24  ;;  %v1397_v24 = vmul.f32 %v1395_v21, %v3650_v16  ;;  %v1402_v16 = vmul.f32 %v1395_v21, %v3627_v1  ;;  %v1405_v1 = vmul.f32 %v1395_v21, %v3622_v62  ;;  %v1409_v62 = vmul.f32 %v1395_v21, %v3609_v55  ;;  %v2891_v55 = vld [vmem:[%s3566_s3] sm:$0xff]  }
 0x2e0   : > { %2564 = vmatprep.subr.bf16.mxu0 %v1432_v47 }
 0x2e3   : > { %2565 = vmatpush3.bf16.msra.mxu0 %v1432_v47 }
 0x2e4   : > { %2566 = vmatprep.subr.bf16.mxu0 %v1431_v29 }
 0x2e7   : > { %2567 = vmatpush3.bf16.msra.mxu0 %v1431_v29 }
 0x2e8   : > { %2568 = vmatprep.subr.bf16.mxu0 %v1430_v52 }
 0x2eb   : > { %2569 = vmatpush3.bf16.msra.mxu0 %v1430_v52  ;;  %v1406_v52 = vmul.f32 %v1395_v21, %v3614_v58  ;;  %v1408_v58 = vmul.f32 %v1395_v21, %v3607_v54  ;;  %v2889_v54 = vld [vmem:[%s3566_s3 + $0x10] sm:$0xff]  }
 0x2ec   : > { %2570 = vmatprep.subr.bf16.mxu0 %v1429_v45 }
 0x2ef   : > { %2571 = vmatpush3.bf16.msra.mxu0 %v1429_v45 }
 0x2f0   : > { %2572 = vmatprep.subr.bf16.mxu0 %v1428_v40 }
 0x2f3   : > { %2573 = vmatpush3.bf16.msra.mxu0 %v1428_v40 }
 0x2f4   : > { %2622 = vmatprep.subr.bf16.mxu0 %v2884_v18 }
 0x2f6   : > { %2575 = vmatmul.mubr.bf16.vlgmr.msra.gmra.mxu0 %v2869_v41 }
 0x2f7   : > { %2578 = vmatprep.mubr.bf16.mxu0 %v2870_v10  ;;  %2623 = vmatpush3.bf16.msra.mxu0 %v2884_v18 }
 0x2f8   : > { %2624 = vmatprep.subr.bf16.mxu0 %v2885_v63 }
 0x2fb   : > { %2625 = vmatpush3.bf16.msra.mxu0 %v2885_v63 }
 0x2fc   : > { %2626 = vmatprep.subr.bf16.mxu0 %v2886_v19 }
 0x2fe   : > { %2579 = vmatmul.mubr.bf16.gmra.mxu0 %v2871_v46 }
 0x2ff   : > { %2582 = vmatprep.mubr.bf16.mxu0 %v2872_v36  ;;  %2627 = vmatpush3.bf16.msra.mxu0 %v2886_v19  ;;  %v1410_v36 = vmul.f32 %v1395_v21, %v3600_v50  ;;  %v2890_v50 = vld [vmem:[%s3566_s3 + $0x8] sm:$0xff]  }
 0x300   : > { %2628 = vmatprep.subr.bf16.mxu0 %v2887_v20 }
 0x303   : > { %2629 = vmatpush3.bf16.msra.mxu0 %v2887_v20 }
 0x304   : > { %2630 = vmatprep.subr.bf16.mxu0 %v3718_v22 }
 0x306   : > { %2583 = vmatmul.mubr.bf16.gmra.mxu0 %v2873_v42 }
 0x307   : > { %2586 = vmatprep.mubr.bf16.mxu0 %v2874_v37  ;;  %2631 = vmatpush3.bf16.msra.mxu0 %v3718_v22 }
 0x308   : > { %2632 = vmatprep.subr.bf16.mxu0 %v2889_v54 }
 0x30b   : > { %2633 = vmatpush3.bf16.msra.mxu0 %v2889_v54 }
 0x30c   : > { %2634 = vmatprep.subr.bf16.mxu0 %v2890_v50 }
 0x30e   : > { %2587 = vmatmul.mubr.bf16.gmra.mxu0 %v2875_v38 }
 0x30f   : > { %2635 = vmatpush3.bf16.msra.mxu0 %v2890_v50 }
 0x310   : > { %2636 = vmatprep.subr.bf16.mxu0 %v2891_v55 }
 0x313   : > { %2637 = vmatpush3.bf16.msra.mxu0 %v2891_v55 }
 0x3b6   : > { %v2576_v8 = vpop.f32.mrf.mxu0 }
 0x3b7   : > { %v1583_v28 = vadd.f32 %v2576_v8, %v1398_v3 }
 0x3b8   : > { %v1518_v9 = vpop.f32.mrf.mxu0 }
 0x3b9   : > { %v1581_v13 = vadd.f32 %v1518_v9, %v1396_v0 }
 0x3ba   : > { %v2577_v25 = vpop.f32.mrf.mxu0 }
 0x3bb   : > { %v1584_v26 = vadd.f32 %v2577_v25, %v1399_v23 }
 0x3bc   : > { %v1521_v53 = vpop.f32.mrf.mxu0 }
 0x3bd   : > { %v1582_v27 = vadd.f32 %v1521_v53, %v1397_v24  ;;  %v1598_v6 = vpack.c.bf16 %v1584_v26, %v1583_v28 }
 0x3be   : > { %v2580_v47 = vpop.f32.mrf.mxu0 }
 0x3bf   : > { %v1597_v56 = vpack.c.bf16 %v1582_v27, %v1581_v13  ;;  %v1587_v60 = vadd.f32 %v2580_v47, %v1402_v16 }
 0x3c0   : > { %v1534_v57 = vpop.f32.mrf.mxu0 }
 0x3c1   : > { %2606 = vmatprep.mubr.bf16.mxu1 %v1597_v56  ;;  %v1585_v30 = vadd.f32 %v1534_v57, %v1400_v12 }
 0x3c2   : > { %v2581_v11 = vpop.f32.mrf.mxu0  ;;  %2607 = vmatmul.mubr.bf16.vlgmr.msra.gmra.mxu1 %v1598_v6 }
 0x3c3   : > { %2698 = vmatpush3.bf16.msra.mxu1 %v2884_v18  ;;  %v1588_v49 = vadd.f32 %v2581_v11, %v1403_v48 }
 0x3c4   : > { %v1537_v29 = vpop.f32.mrf.mxu0  ;;  %2691 = vmatprep.subr.bf16.mxu1 %v2885_v63 }
 0x3c5   : > { %v1586_v43 = vadd.f32 %v1537_v29, %v1401_v15  ;;  %v1600_v2 = vpack.c.bf16 %v1588_v49, %v1587_v60 }
 0x3c6   : > { %v2584_v31 = vpop.f32.mrf.mxu0 }
 0x3c7   : > { %v1599_v39 = vpack.c.bf16 %v1586_v43, %v1585_v30  ;;  %2699 = vmatpush3.bf16.msra.mxu1 %v2885_v63  ;;  %v1591_v40 = vadd.f32 %v2584_v31, %v1406_v52 }
 0x3c8   : > { %v1550_v32 = vpop.f32.mrf.mxu0  ;;  %2692 = vmatprep.subr.bf16.mxu1 %v2886_v19 }
 0x3c9   : > { %2610 = vmatprep.mubr.bf16.mxu1 %v1599_v39  ;;  %v1589_v34 = vadd.f32 %v1550_v32, %v1404_v5 }
 0x3ca   : > { %v2585_v33 = vpop.f32.mrf.mxu0  ;;  %2611 = vmatmul.mubr.bf16.gmra.mxu1 %v1600_v2 }
 0x3cb   : > { %2700 = vmatpush3.bf16.msra.mxu1 %v2886_v19  ;;  %v1592_v44 = vadd.f32 %v2585_v33, %v1407_v4 }
 0x3cc   : > { %v1553_v45 = vpop.f32.mrf.mxu0  ;;  %2693 = vmatprep.subr.bf16.mxu1 %v2887_v20 }
 0x3cd   : > { %v1590_v35 = vadd.f32 %v1553_v45, %v1405_v1  ;;  %v1602_v59 = vpack.c.bf16 %v1592_v44, %v1591_v40 }
 0x3ce   : > { %v2588_v41 = vpop.f32.mrf.mxu0 }
 0x3cf   : > { %v1601_v10 = vpack.c.bf16 %v1590_v35, %v1589_v34  ;;  %2701 = vmatpush3.bf16.msra.mxu1 %v2887_v20  ;;  %v1595_v51 = vadd.f32 %v2588_v41, %v1410_v36  ;;  %v2330_v20 = vld [vmem:[%s703_s17] ss:$0 sm:$0xff] }
 0x3d0   : > { %v1566_v46 = vpop.f32.mrf.mxu0  ;;  %2694 = vmatprep.subr.bf16.mxu1 %v3718_v22 }
 0x3d1   : > { %2614 = vmatprep.mubr.bf16.mxu1 %v1601_v10  ;;  %v1593_v7 = vadd.f32 %v1566_v46, %v1408_v58 }
 0x3d2   : > { %v2589_v42 = vpop.f32.mrf.mxu0  ;;  %2615 = vmatmul.mubr.bf16.gmra.mxu1 %v1602_v59 }
 0x3d3   : > { %2702 = vmatpush3.bf16.msra.mxu1 %v3718_v22  ;;  %v1596_v37 = vadd.f32 %v2589_v42, %v1411_v61 }
 0x3d4   : > { %v1569_v38 = vpop.f32.mrf.mxu0  ;;  %2695 = vmatprep.subr.bf16.mxu1 %v2889_v54 }
 0x3d5   : > { %v1594_v14 = vadd.f32 %v1569_v38, %v1409_v62  ;;  %v1604_v18 = vpack.c.bf16 %v1596_v37, %v1595_v51 }
 0x3d7   : > { %v1603_v17 = vpack.c.bf16 %v1594_v14, %v1593_v7  ;;  %2703 = vmatpush3.bf16.msra.mxu1 %v2889_v54  ;;  %v2339_v14 = vld [vmem:[%s706_s25] ss:$0 sm:$0xff] }
 0x3d8   : > { %2696 = vmatprep.subr.bf16.mxu1 %v2890_v50 }
 0x3d9   : > { %2618 = vmatprep.mubr.bf16.mxu1 %v1603_v17 }
 0x3da   : > { %2619 = vmatmul.mubr.bf16.gmra.mxu1 %v1604_v18 }
 0x3db   : > { %2704 = vmatpush3.bf16.msra.mxu1 %v2890_v50 }
 0x3dc   : > { %2697 = vmatprep.subr.bf16.mxu1 %v2891_v55 }
 0x3df   : > { %2705 = vmatpush3.bf16.msra.mxu1 %v2891_v55 }
 0x482   : > { %v2608_v63 = vpop.f32.mrf.mxu1 }
 0x483   : > { %v1719_v9 = vadd.f32 %v2608_v63, %v2330_v20 }
 0x484   : > { %v1710_v19 = vpop.f32.mrf.mxu1 }
 0x485   : > { %v1711_v8 = vadd.f32 %v2330_v20, %v1710_v19  ;;  %v1775_v53 = vmax.f32 %v1719_v9, 0.0 }
 0x486   : > { %v2609_v22 = vpop.f32.mrf.mxu1 }
 0x487   : > { %v1722_v21 = vadd.f32 %v2609_v22, %v2330_v20  ;;  %v1773_v25 = vmax.f32 %v1711_v8, 0.0 }
 0x488   : > { %v1713_v23 = vpop.f32.mrf.mxu1 }
 0x489   : > { %v1714_v0 = vadd.f32 %v2330_v20, %v1713_v23  ;;  %v1776_v24 = vmax.f32 %v1722_v21, 0.0 }
 0x48a   : > { %v2612_v3 = vpop.f32.mrf.mxu1 }
 0x48b   : > { %v1774_v26 = vmax.f32 %v1714_v0, 0.0  ;;  %v1790_v28 = vpack.c.bf16 %v1776_v24, %v1775_v53  ;;  %v1735_v57 = vadd.f32 %v2612_v3, %v2330_v20 }
 0x48c   : > { %v1726_v13 = vpop.f32.mrf.mxu1 }
 0x48d   : > { %v1789_v27 = vpack.c.bf16 %v1774_v26, %v1773_v25  ;;  %v1727_v56 = vadd.f32 %v2330_v20, %v1726_v13  ;;  %v1779_v29 = vmax.f32 %v1735_v57, 0.0 }
 0x48e   : > { %v2613_v47 = vpop.f32.mrf.mxu1 }
 0x48f   : > { %v1738_v6 = vadd.f32 %v2613_v47, %v2330_v20  ;;  %2638 = vmatprep.mubr.bf16.mxu0 %v1789_v27  ;;  %v1777_v11 = vmax.f32 %v1727_v56, 0.0 }
 0x490   : > { %v1729_v48 = vpop.f32.mrf.mxu1  ;;  %2639 = vmatmul.mubr.bf16.vlgmr.msra.gmra.mxu0 %v1790_v28 }
 0x491   : > { %v1730_v12 = vadd.f32 %v2330_v20, %v1729_v48  ;;  %v1780_v15 = vmax.f32 %v1738_v6, 0.0 }
 0x492   : > { %v2616_v16 = vpop.f32.mrf.mxu1 }
 0x493   : > { %v1778_v49 = vmax.f32 %v1730_v12, 0.0  ;;  %v1792_v60 = vpack.c.bf16 %v1780_v15, %v1779_v29  ;;  %v1751_v32 = vadd.f32 %v2616_v16, %v2330_v20 }
 0x494   : > { %v1742_v30 = vpop.f32.mrf.mxu1 }
 0x495   : > { %v1791_v43 = vpack.c.bf16 %v1778_v49, %v1777_v11  ;;  %v1743_v39 = vadd.f32 %v2330_v20, %v1742_v30  ;;  %v1783_v45 = vmax.f32 %v1751_v32, 0.0 }
 0x496   : > { %v2617_v31 = vpop.f32.mrf.mxu1 }
 0x497   : > { %v1754_v2 = vadd.f32 %v2617_v31, %v2330_v20  ;;  %2642 = vmatprep.mubr.bf16.mxu0 %v1791_v43  ;;  %v1781_v33 = vmax.f32 %v1743_v39, 0.0 }
 0x498   : > { %v1745_v4 = vpop.f32.mrf.mxu1  ;;  %2643 = vmatmul.mubr.bf16.gmra.mxu0 %v1792_v60 }
 0x499   : > { %v1746_v5 = vadd.f32 %v2330_v20, %v1745_v4  ;;  %v1784_v1 = vmax.f32 %v1754_v2, 0.0 }
 0x49a   : > { %v2620_v52 = vpop.f32.mrf.mxu1 }
 0x49b   : > { %v1782_v44 = vmax.f32 %v1746_v5, 0.0  ;;  %v1794_v40 = vpack.c.bf16 %v1784_v1, %v1783_v45  ;;  %v1767_v46 = vadd.f32 %v2620_v52, %v2330_v20 }
 0x49c   : > { %v1758_v34 = vpop.f32.mrf.mxu1 }
 0x49d   : > { %v1793_v35 = vpack.c.bf16 %v1782_v44, %v1781_v33  ;;  %v1759_v10 = vadd.f32 %v2330_v20, %v1758_v34  ;;  %v1787_v37 = vmax.f32 %v1767_v46, 0.0 }
 0x49e   : > { %v2621_v41 = vpop.f32.mrf.mxu1 }
 0x49f   : > { %v1770_v59 = vadd.f32 %v2621_v41, %v2330_v20  ;;  %2646 = vmatprep.mubr.bf16.mxu1 %v1793_v35  ;;  %v1785_v36 = vmax.f32 %v1759_v10, 0.0 }
 0x4a0   : > { %v1761_v61 = vpop.f32.mrf.mxu1  ;;  %2647 = vmatmul.mubr.bf16.vlgmr.msra.gmra.mxu1 %v1794_v40 }
 0x4a1   : > { %v1762_v58 = vadd.f32 %v2330_v20, %v1761_v61  ;;  %v1788_v62 = vmax.f32 %v1770_v59, 0.0 }
 0x4a3   : > { %v1786_v42 = vmax.f32 %v1762_v58, 0.0  ;;  %v1796_v7 = vpack.c.bf16 %v1788_v62, %v1787_v37 }
 0x4a5   : > { %v1795_v38 = vpack.c.bf16 %v1786_v42, %v1785_v36 }
 0x4a7   : > { %2650 = vmatprep.mubr.bf16.mxu1 %v1795_v38 }
 0x4a8   : > { %2651 = vmatmul.mubr.bf16.gmra.mxu1 %v1796_v7 }
 0x550   : > { %v2640_v51 = vpop.f32.mrf.mxu0 }
 0x551   : > { %v3754_v17 = vadd.f32 %v2640_v51, %v2339_v14 }
 0x552   : > { %v1902_v18 = vpop.f32.mrf.mxu0 }
 0x553   : > { %v3756_v54 = vadd.f32 %v2339_v14, %v1902_v18 }
 0x554   : > { %v2641_v50 = vpop.f32.mrf.mxu0 }
 0x555   : > { %v3758_v55 = vadd.f32 %v2641_v50, %v2339_v14 }
 0x556   : > { %v1905_v63 = vpop.f32.mrf.mxu0 }
 0x557   : > { %v3760_v19 = vadd.f32 %v2339_v14, %v1905_v63 }
 0x558   : > { %v2644_v20 = vpop.f32.mrf.mxu0 }
 0x559   : > { %v3762_v22 = vadd.f32 %v2644_v20, %v2339_v14 }
 0x55a   : > { %v1918_v8 = vpop.f32.mrf.mxu0 }
 0x55b   : > { %v3764_v21 = vadd.f32 %v2339_v14, %v1918_v8 }
 0x55c   : > { %v2645_v9 = vpop.f32.mrf.mxu0 }
 0x55d   : > { %v3766_v23 = vadd.f32 %v2645_v9, %v2339_v14 }
 0x55e   : > { %v1921_v0 = vpop.f32.mrf.mxu0 }
 0x55f   : > { %v3768_v24 = vadd.f32 %v2339_v14, %v1921_v0 }
 0x560   : > { %v2648_v3 = vpop.f32.mrf.mxu1 }
 0x561   : > { %v3770_v25 = vadd.f32 %v2648_v3, %v2339_v14 }
 0x562   : > { %v1934_v26 = vpop.f32.mrf.mxu1 }
 0x563   : > { %v3772_v53 = vadd.f32 %v2339_v14, %v1934_v26 }
 0x564   : > { %v2649_v13 = vpop.f32.mrf.mxu1 }
 0x565   : > { %v1946_v27 = vadd.f32 %v2649_v13, %v2339_v14 }
 0x566   : > { %v1937_v28 = vpop.f32.mrf.mxu1 }
 0x567   : > { %v3774_v47 = vadd.f32 %v2339_v14, %v1937_v28 }
 0x568   : > { %v2652_v56 = vpop.f32.mrf.mxu1 }
 0x569   : > { %v1959_v6 = vadd.f32 %v2652_v56, %v2339_v14 }
 0x56a   : > { %v1950_v57 = vpop.f32.mrf.mxu1 }
 0x56b   : > { %v1951_v48 = vadd.f32 %v2339_v14, %v1950_v57  ;;  %1968 = sbr.rel (%p2348_p0) target bundleno = 1402 (0x57a), region = 124 }
 0x56c   : > { %v2653_v12 = vpop.f32.mrf.mxu1 }
 0x56d   : > { %v1962_v15 = vadd.f32 %v2653_v12, %v2339_v14 }
 0x56e   : > { %v1953_v16 = vpop.f32.mrf.mxu1 }
 0x56f   : > { %v1954_v11 = vadd.f32 %v2339_v14, %v1953_v16 }
 0x570   : > { %v1969_v49 = vmax.f32 %v3756_v54, 0.0  ;;  %v1970_v29 = vmax.f32 %v3760_v19, 0.0  ;;  %v1971_v30 = vmax.f32 %v3754_v17, 0.0  ;;  %v1972_v43 = vmax.f32 %v3758_v55, 0.0 }
 0x571   : > { %v1973_v60 = vmax.f32 %v3764_v21, 0.0  ;;  %v1974_v31 = vmax.f32 %v3768_v24, 0.0  ;;  %v1975_v39 = vmax.f32 %v3762_v22, 0.0  ;;  %v1976_v2 = vmax.f32 %v3766_v23, 0.0 }
 0x572   : > { %1985 = vst [vmem:[#allocation2 + $0x30] sm:$0xff] %v1969_v49  ;;  %1986 = vst [vmem:[#allocation2] sm:$0xff] %v1970_v29  ;;  %v1977_v32 = vmax.f32 %v3772_v53, 0.0  ;;  %v1978_v4 = vmax.f32 %v3774_v47, 0.0  ;;  %v1979_v5 = vmax.f32 %v3770_v25, 0.0  ;;  %v1980_v1 = vmax.f32 %v1946_v27, 0.0 }
 0x573   : > { %1987 = vst [vmem:[#allocation2 + $0x58] sm:$0xff] %v1971_v30  ;;  %1988 = vst [vmem:[#allocation2 + $0x18] sm:$0xff] %v1972_v43  ;;  %v1981_v52 = vmax.f32 %v1951_v48, 0.0  ;;  %v1982_v33 = vmax.f32 %v1954_v11, 0.0  ;;  %v1983_v44 = vmax.f32 %v1959_v6, 0.0  ;;  %v1984_v45 = vmax.f32 %v1962_v15, 0.0 }
 0x574   : > { %1989 = vst [vmem:[#allocation2 + $0x50] sm:$0xff] %v1973_v60  ;;  %1990 = vst [vmem:[#allocation2 + $0x68] sm:$0xff] %v1974_v31 }
 0x575   : > { %1991 = vst [vmem:[#allocation2 + $0x8] sm:$0xff] %v1975_v39  ;;  %1992 = vst [vmem:[#allocation2 + $0x48] sm:$0xff] %v1976_v2 }
 0x576   : > { %1993 = vst [vmem:[#allocation2 + $0x40] sm:$0xff] %v1977_v32  ;;  %1994 = vst [vmem:[#allocation2 + $0x20] sm:$0xff] %v1978_v4 }
 0x577   : > { %1995 = vst [vmem:[#allocation2 + $0x10] sm:$0xff] %v1979_v5  ;;  %1996 = vst [vmem:[#allocation2 + $0x38] sm:$0xff] %v1980_v1 }
 0x578   : > { %1997 = vst [vmem:[#allocation2 + $0x60] sm:$0xff] %v1981_v52  ;;  %1998 = vst [vmem:[#allocation2 + $0x70] sm:$0xff] %v1982_v33 }
 0x579   : > { %1999 = vst [vmem:[#allocation2 + $0x78] sm:$0xff] %v1983_v44  ;;  %2000 = vst [vmem:[#allocation2 + $0x28] sm:$0xff] %v1984_v45 }
 0x57a PF: > { %2004 = sbr.rel (%p698_p3) target bundleno = 1639 (0x667), region = 128  ;;  %s3903_s4 = sld [smem:[#allocation33_spill]] (!%p698_p3) }
 0x57b   : > { %s3904_s16 = sld [smem:[#allocation32_spill]] (!%p698_p3) }
 0x57f   : > { %v2013_v34 = vpack.c.bf16 %v1962_v15, %v1959_v6  ;;  %v3217_v35 = vmov 0.0   ;;  %v2012_v40 = vpack.c.bf16 %v1954_v11, %v1951_v48  ;;  %vm3218_vm0 = vmmov 0  }
 0x580   : > { %2654 = vmatprep.subr.bf16.mxu0 %v3217_v35  ;;  %v2054_v41 = vld [vmem:[%s3903_s4] sm:$0xff]  ;;  %2670 = vmatprep.mubr.msk.bf16.mxu0 %vm3218_vm0, %v3217_v35  ;;  %v3219_v10 = vmov 0   ;;  %v2011_v59 = vpack.c.bf16 %v1946_v27, %v3770_v25  ;;  %v2010_v46 = vpack.c.bf16 %v3774_v47, %v3772_v53  ;;  %v2009_v61 = vpack.c.bf16 %v3766_v23, %v3762_v22 }
 0x581   : > { %2655 = vmatpush3.bf16.msra.mxu0 %v2013_v34  ;;  %2892 = vset.pattern.permute.xlu0 %v3219_v10  ;;  %v2008_v58 = vpack.c.bf16 %v3768_v24, %v3764_v21  ;;  %v2007_v62 = vpack.c.bf16 %v3758_v55, %v3754_v17  ;;  %v2006_v36 = vpack.c.bf16 %v3760_v19, %v3756_v54  ;;  %v2005_v42 = vld [vmem:[%s3904_s16] sm:$0xf] }
 0x582   : > { %2656 = vmatprep.subr.bf16.mxu0 %v3217_v35  ;;  %2057 = vperm.xlu0 %2892, %v2054_v41  }
 0x585   : > { %2657 = vmatpush3.bf16.msra.mxu0 %v2012_v40 }
 0x586   : > { %2658 = vmatprep.subr.bf16.mxu0 %v3217_v35 }
 0x589   : > { %2659 = vmatpush3.bf16.msra.mxu0 %v2011_v59 }
 0x58a   : > { %2660 = vmatprep.subr.bf16.mxu0 %v3217_v35 }
 0x58d   : > { %2661 = vmatpush3.bf16.msra.mxu0 %v2010_v46 }
 0x58e   : > { %2662 = vmatprep.subr.bf16.mxu0 %v3217_v35 }
 0x591   : > { %2663 = vmatpush3.bf16.msra.mxu0 %v2009_v61 }
 0x592   : > { %2664 = vmatprep.subr.bf16.mxu0 %v3217_v35 }
 0x595   : > { %2665 = vmatpush3.bf16.msra.mxu0 %v2008_v58 }
 0x596   : > { %2666 = vmatprep.subr.bf16.mxu0 %v3217_v35 }
 0x599   : > { %2667 = vmatpush3.bf16.msra.mxu0 %v2007_v62 }
 0x59a   : > { %2668 = vmatprep.subr.bf16.mxu0 %v3217_v35 }
 0x59d   : > { %2669 = vmatpush3.bf16.msra.mxu0 %v2006_v36 }
 0x5a0   : > { %2671 = vmatmul.mubr.bf16.vlgmr.msra.gmra.mxu0 %v2005_v42 }
 0x5fd   : > { %v2058_v37 = vpop.permute.xlu0 %2057 }
 0x660   : > { %v2048_v38 = vpop.f32.mrf.mxu0 }
 0x661   : > { %v2060_v7 = vmul.f32 %v2058_v37, %v2048_v38 }
 0x662   : > { %v2672_v14 = vpop.f32.mrf.mxu0 }
 0x663   : > { %2061 = vst [vmem:[#allocation19] sm:$0xff] %v2060_v7 }
 0x664   : > { %v2051_v51 = vpop.f32.mrf.mxu0 }
 0x666   : > { %v2673_v18 = vpop.f32.mrf.mxu0 }
 0x667 PF: > { %p2782_p8 = scmp.eq.s32.totalorder %s3322_s22, 1  ;;  %s3220_s29 = smov [#allocation19]  }
 0x668   : > { %s2069_s25 = sshll.u32 %s3220_s29, 4  ;;  %s2070_s25 = int_to_ptr.vmem [resolvable:$true] %s2069_s25 }
 0x669   : > { %s3122_s28 = scalar_lea.vmem %s2070_s25, 128  ;;  %p3129_p6 = scmp.lt.s32.totalorder %s2070_s25, %s2070_s25 }
 0x66a   : > { %p3123_p13 = scmp.ne.s32.totalorder %s2070_s25, %s3122_s28  ;;  %p3130_p7 = scmp.lt.s32.totalorder %s3122_s28, %s3122_s28 }
 0x66c   : > { %p3124_p1 = pnand %p3123_p13, %p2782_p8  ;;  %p3131_p10 = por %p3130_p7, %p3129_p6 }
 0x66e   : > { %p3125_p4 = pneg %p3124_p1 }
 0x670   : > { %p3132_p11 = pnand %p3131_p10, %p3125_p4 }
 0x672   : > { %3135 = shalt.err (!%p3132_p11)
}
 0x673   : > { %s3905_s18 = sld [smem:[#allocation37_spill]] }
 0x679   : > { %2737 = dma.vmem_to_hbm [thread:$0]  (%p2782_p8), %s2070_s25, 128, %s3905_s18, [#allocation5]  }
 0x67a   : > { %3187 = dma.done.wait (%p2782_p8), [#allocation5], 128  }
 0x67b   : > { %3189 = vsyncadd (%p2782_p8), [#allocation5], 4294967168 }
 0x67c PF: > { %s3906_s21 = sld [smem:[#allocation27_spill]]  ;;  %s3908_s18 = smov %s3196_s19 }
 0x67d   : > { %s3907_s7 = sld [smem:[#allocation28_spill]]  ;;  %s3909_s19 = smov %s3200_s20 }
 0x682   : > { %p33_p2 = scmp.ge.s32.totalorder %s3906_s21, 4  }
 0x683   : > { %s3910_s20 = smov %s3907_s7 }
 0x684   :  { %35 = sbr.rel (!%p33_p2) target bundleno = 20 (0x14), region = 188 }
 0x689   :  { %2082 = vsyncpa [#allocation4], 1 }
 0x68a   :  { %2084 = vsyncpa [#allocation4 + $0x1], 1 }
 0x68b   :  { %2085 = vsyncpa [#allocation8], 1 }
 0x68c   :  { %2086 = vsyncpa [#allocation11], 1 }
 0x68d   :  { %2087 = vsyncpa [#allocation14], 1 }
 0x68e   :  { %2089 = vsyncpa [#allocation14 + $0x1], 1 }
 0x68f   :  { %2090 = vsyncpa [#allocation17], 1 }
 0x690   :  { %2092 = vsyncpa [#allocation17 + $0x1], 1 }
 0x691   :  { %2093 = vsyncpa [#allocation5], 1 }
 0x692   :  { %2095 = vsyncpa [#allocation5 + $0x1], 1 }
 0x693   :  { %2096 = vsyncpa [#allocation6], 1 }
 0x694   :  { %2098 = vsyncpa [#allocation6 + $0x1], 1 }

</bundles_post_ra>
